<compile_context>
chip_gen: v7x
topology: tpu7x:2x2x1
jax: 0.10.0
libtpu: 0.0.40
codegen_flags: <defaults>
</compile_context>

<pallas_src>
import functools

import numpy as np
import jax
import jax.numpy as jnp
from jax.experimental import pallas as pl
from jax.experimental.pallas import tpu as pltpu

# --- small config consistent with the module structure ---
IMG = 16          # img_size
PATCH = 8         # patch_size
CIN = 4           # in_channels
EMBED = 32        # embed_dim
DEPTH = 2         # depth
HEADS = 4         # n_heads
MLP_RATIO = 4
NCLS = 2          # n_classes
BATCH = 2

NPATCH = (IMG // PATCH) ** 2
SEQ = NPATCH + 1
HEAD_DIM = EMBED // HEADS
MLP_DIM = EMBED * MLP_RATIO
PATCH_DIM = CIN * PATCH * PATCH
LN_EPS = 1e-5
HEAD_PAD = 128    # lane-dense padding of the classifier output
OUT_ROWS = 8      # sublane-padded row count of the classifier output tile

BLOCK_KEYS = ("ln1_g", "ln1_b", "qkv_w", "qkv_b", "proj_w", "proj_b",
              "ln2_g", "ln2_b", "fc1_w", "fc1_b", "fc2_w", "fc2_b")
N_BLK = len(BLOCK_KEYS)


def _round_up(n, m):
    return ((n + m - 1) // m) * m


# ----------------------------- in-kernel helpers -----------------------------

def _mm(x, w):
    """MXU matmul: bf16 operands, f32 accumulation (weights already bf16)."""
    return jnp.dot(x.astype(jnp.bfloat16), w.astype(jnp.bfloat16),
                   preferred_element_type=jnp.float32)


def _layernorm(x, g, b):
    mean = jnp.mean(x, axis=-1, keepdims=True)
    xc = x - mean
    var = jnp.mean(xc * xc, axis=-1, keepdims=True)   # biased, like nn.LayerNorm
    return xc * jax.lax.rsqrt(var + LN_EPS) * g + b


def _gelu(y):
    # TODO(synk): PyTorch nn.GELU defaults to the exact erf form; tanh
    # approximation is used here (erf has no guaranteed Mosaic lowering).
    c = 0.7978845608028654  # sqrt(2/pi)
    return 0.5 * y * (1.0 + jnp.tanh(c * (y + 0.044715 * y * y * y)))


# ----------------------------- fused forward kernel -----------------------------

def _vit_kernel(*refs, batch, depth):
    """batch = images handled by this kernel invocation (B fused, 1 per-core)."""
    n_in = 6 + depth * N_BLK + 4
    xp_ref, mask_ref, pw_ref, pb_ref, cls_ref, pos_ref = refs[:6]
    blocks = [refs[6 + i * N_BLK: 6 + (i + 1) * N_BLK] for i in range(depth)]
    ng_ref, nb_ref, hw_ref, hb_ref = refs[6 + depth * N_BLK: n_in]
    out_ref = refs[n_in]
    x_scr = refs[n_in + 1]      # [rows_pad, EMBED] f32
    cls_scr = refs[n_in + 2]    # [OUT_ROWS, EMBED] f32

    # ---- patch embedding: ONE matmul over every patch of this step (#4) ----
    xp = xp_ref[...].reshape(batch * NPATCH, PATCH_DIM)
    pe = _mm(xp, pw_ref[...]) + pb_ref[...]              # [batch*NPATCH, E] f32

    # ---- assemble cls + patch tokens (+pos) into the row-padded stream (#9) ----
    x_scr[...] = jnp.zeros_like(x_scr)                   # pad rows must be zero
    cls_row = cls_ref[...] + pos_ref[pl.ds(0, 1), :]     # [1, E]
    posp = pos_ref[pl.ds(1, NPATCH), :]                  # [NPATCH, E]
    for b in range(batch):
        x_scr[pl.ds(b * SEQ, 1), :] = cls_row
        x_scr[pl.ds(b * SEQ + 1, NPATCH), :] = (
            pe[b * NPATCH:(b + 1) * NPATCH, :] + posp)
    x = x_scr[...]                                       # [rows_pad, E]

    mask = mask_ref[...]                                 # precomputed on host (#8)
    scale = 1.0 / (HEAD_DIM ** 0.5)

    # ---- transformer blocks (unrolled; everything stays in VMEM/vregs) ----
    for (ln1_g, ln1_b, qkv_w, qkv_b, proj_w, proj_b,
         ln2_g, ln2_b, fc1_w, fc1_b, fc2_w, fc2_b) in blocks:
        # multi-head self-attention
        h = _layernorm(x, ln1_g[...], ln1_b[...])
        qkv = _mm(h, qkv_w[...]) + qkv_b[...]            # [R, 3E] f32
        q_sec = qkv[:, 0:EMBED]
        kT = jnp.transpose(qkv[:, EMBED:2 * EMBED])      # [E, R]  (one transpose, #2)
        v_sec = qkv[:, 2 * EMBED:3 * EMBED]

        heads_out = []
        for hd in range(HEADS):
            lo = hd * HEAD_DIM
            q_h = q_sec[:, lo:lo + HEAD_DIM].astype(jnp.bfloat16)    # [R, Dh]
            kT_h = kT[lo:lo + HEAD_DIM, :].astype(jnp.bfloat16)      # [Dh, R] sublane slice
            v_h = v_sec[:, lo:lo + HEAD_DIM].astype(jnp.bfloat16)    # [R, Dh]
            s = jnp.dot(q_h, kT_h, preferred_element_type=jnp.float32)  # bf16 MXU (#1)
            s = s * scale + mask                                     # [R, R]
            s = s - jnp.max(s, axis=-1, keepdims=True)
            p = jnp.exp(s)
            p = p * pl.reciprocal(jnp.sum(p, axis=-1, keepdims=True), approx=True)
            o_h = jnp.dot(p.astype(jnp.bfloat16), v_h,
                          preferred_element_type=jnp.float32)        # [R, Dh]
            heads_out.append(o_h)
        attn = jnp.concatenate(heads_out, axis=1)        # [R, E] == concat(heads)
        x = x + _mm(attn, proj_w[...]) + proj_b[...]

        # MLP
        h2 = _layernorm(x, ln2_g[...], ln2_b[...])
        h2 = _gelu(_mm(h2, fc1_w[...]) + fc1_b[...])
        x = x + _mm(h2, fc2_w[...]) + fc2_b[...]

    # ---- gather cls rows only, final LN + classifier head (#5) ----
    cls_scr[...] = jnp.zeros_like(cls_scr)
    for b in range(batch):
        cls_scr[pl.ds(b, 1), :] = x[b * SEQ:b * SEQ + 1, :]
    xn = _layernorm(cls_scr[...], ng_ref[...], nb_ref[...])          # [8, E]
    logits = _mm(xn, hw_ref[...]) + hb_ref[...]                      # [8, HEAD_PAD]
    out_ref[...] = logits.reshape(out_ref.shape)                     # full-tile store


# ----------------------------- wrapper -----------------------------

_VMEM = pl.BlockSpec(memory_space=pltpu.MemorySpace.VMEM)


def _use_batch_parallel_grid():
    """True on multi-TensorCore chips (v7x): shard the batch across cores (#7)."""
    try:
        kind = jax.devices()[0].device_kind.lower()
    except Exception:
        return False
    return "v7" in kind


def _block_diag_mask(rows_pad):
    """Additive mask: token attends only within its own image; pad rows isolated."""
    grp = np.arange(rows_pad) // SEQ
    m = np.where(grp[:, None] == grp[None, :], 0.0, -1e30).astype(np.float32)
    return jnp.asarray(m)


def _flatten_params(params):
    flat = [params["patch_w"], params["patch_b"],
            params["cls_token"], params["pos_embedding"]]
    for blk in params["blocks"]:
        flat.extend(blk[k] for k in BLOCK_KEYS)
    flat.extend([params["norm_g"], params["norm_b"],
                 params["head_w"], params["head_b"]])
    return flat


def vit_forward(x, params):
    """x: [B, CIN, IMG, IMG] -> logits [B, NCLS]."""
    B = x.shape[0]
    depth = len(params["blocks"])

    # Patch extraction (pure layout op): flatten order (C, ph, pw) matches the
    # torch Conv2d weight flatten order; patch order is spatial row-major.
    xp = x.reshape(B, CIN, IMG // PATCH, PATCH, IMG // PATCH, PATCH)
    xp = xp.transpose(0, 2, 4, 1, 3, 5).reshape(B, NPATCH, PATCH_DIM)

    weights = _flatten_params(params)
    use_grid = _use_batch_parallel_grid() and B > 1

    if use_grid:
        # v7x: one image per TensorCore.
        per_step_batch = 1
        rows_pad = _round_up(SEQ, 8)
        xp_in = xp                                           # [B, NPATCH, PATCH_DIM]
        in_specs = ([pl.BlockSpec((1, NPATCH, PATCH_DIM), lambda b: (b, 0, 0)),
                     _VMEM] + [_VMEM] * len(weights))
        out_specs = pl.BlockSpec((1, OUT_ROWS, HEAD_PAD), lambda b: (b, 0, 0))
        out_shape = jax.ShapeDtypeStruct((B, OUT_ROWS, HEAD_PAD), jnp.float32)
        extra = dict(grid=(B,),
                     compiler_params=pltpu.CompilerParams(
                         dimension_semantics=("parallel",)))
    else:
        # v5e/v6e: single fused step, whole batch resident.
        per_step_batch = B
        rows_pad = _round_up(B * SEQ, 8)
        xp_in = xp.reshape(1, B * NPATCH, PATCH_DIM)
        in_specs = [_VMEM] * (2 + len(weights))
        out_specs = _VMEM
        out_shape = jax.ShapeDtypeStruct((1, OUT_ROWS, HEAD_PAD), jnp.float32)
        extra = {}

    mask = _block_diag_mask(rows_pad)

    out = pl.pallas_call(
        functools.partial(_vit_kernel, batch=per_step_batch, depth=depth),
        out_shape=out_shape,
        in_specs=in_specs,
        out_specs=out_specs,
        scratch_shapes=[pltpu.VMEM((rows_pad, EMBED), jnp.float32),
                        pltpu.VMEM((OUT_ROWS, EMBED), jnp.float32)],
        **extra,
    )(xp_in, mask, *weights)

    if use_grid:
        return out[:, 0, :NCLS]
    return out[0, :B, :NCLS]


# ----------------------------- params (synthetic, pre-transposed, bf16 weights) -----------------------------

def init_params(key):
    def nrm(k, shape, scale=0.02):
        return scale * jax.random.normal(k, shape, jnp.float32)

    bf = jnp.bfloat16
    keys = iter(jax.random.split(key, 64))
    params = {
        # conv weight (E, C*ps*ps) stored pre-transposed [K, N] and bf16
        "patch_w": nrm(next(keys), (PATCH_DIM, EMBED)).astype(bf),
        "patch_b": nrm(next(keys), (1, EMBED)),
        "cls_token": nrm(next(keys), (1, EMBED), 1.0),
        "pos_embedding": nrm(next(keys), (SEQ, EMBED), 1.0),
        "norm_g": jnp.ones((1, EMBED), jnp.float32),
        "norm_b": jnp.zeros((1, EMBED), jnp.float32),
        # classifier weight [E, NCLS] padded with zero columns to 128 lanes, bf16
        "head_w": jnp.concatenate(
            [nrm(next(keys), (EMBED, NCLS)),
             jnp.zeros((EMBED, HEAD_PAD - NCLS), jnp.float32)], axis=1).astype(bf),
        "head_b": jnp.zeros((1, HEAD_PAD), jnp.float32),
        "blocks": [],
    }
    for _ in range(DEPTH):
        params["blocks"].append({
            "ln1_g": jnp.ones((1, EMBED), jnp.float32),
            "ln1_b": jnp.zeros((1, EMBED), jnp.float32),
            "qkv_w": nrm(next(keys), (EMBED, 3 * EMBED)).astype(bf),   # [K, N]
            "qkv_b": jnp.zeros((1, 3 * EMBED), jnp.float32),
            "proj_w": nrm(next(keys), (EMBED, EMBED)).astype(bf),      # [K, N]
            "proj_b": jnp.zeros((1, EMBED), jnp.float32),
            "ln2_g": jnp.ones((1, EMBED), jnp.float32),
            "ln2_b": jnp.zeros((1, EMBED), jnp.float32),
            "fc1_w": nrm(next(keys), (EMBED, MLP_DIM)).astype(bf),     # [K, N]
            "fc1_b": jnp.zeros((1, MLP_DIM), jnp.float32),
            "fc2_w": nrm(next(keys), (MLP_DIM, EMBED)).astype(bf),     # [K, N]
            "fc2_b": jnp.zeros((1, EMBED), jnp.float32),
        })
    return params


if __name__ == "__main__":
    key = jax.random.PRNGKey(0)
    pkey, xkey = jax.random.split(key)
    params = init_params(pkey)
    x = jax.random.normal(xkey, (BATCH, CIN, IMG, IMG), jnp.float32)

    out = jax.jit(vit_forward)(x, params)
    jax.block_until_ready(out)
    assert out.shape == (BATCH, NCLS), out.shape
    assert bool(jnp.all(jnp.isfinite(out)))
    print("KERNEL_OK")
</pallas_src>

<mosaic_0001>
module attributes {stable_mosaic.version = 11 : i64} {
  func.func @_vit_kernel(%arg0: memref<1x8x256xf32, #tpu.memory_space<vmem>>, %arg1: memref<16x16xf32, #tpu.memory_space<vmem>>, %arg2: memref<256x32xbf16, #tpu.memory_space<vmem>>, %arg3: memref<1x32xf32, #tpu.memory_space<vmem>>, %arg4: memref<1x32xf32, #tpu.memory_space<vmem>>, %arg5: memref<5x32xf32, #tpu.memory_space<vmem>>, %arg6: memref<1x32xf32, #tpu.memory_space<vmem>>, %arg7: memref<1x32xf32, #tpu.memory_space<vmem>>, %arg8: memref<32x96xbf16, #tpu.memory_space<vmem>>, %arg9: memref<1x96xf32, #tpu.memory_space<vmem>>, %arg10: memref<32x32xbf16, #tpu.memory_space<vmem>>, %arg11: memref<1x32xf32, #tpu.memory_space<vmem>>, %arg12: memref<1x32xf32, #tpu.memory_space<vmem>>, %arg13: memref<1x32xf32, #tpu.memory_space<vmem>>, %arg14: memref<32x128xbf16, #tpu.memory_space<vmem>>, %arg15: memref<1x128xf32, #tpu.memory_space<vmem>>, %arg16: memref<128x32xbf16, #tpu.memory_space<vmem>>, %arg17: memref<1x32xf32, #tpu.memory_space<vmem>>, %arg18: memref<1x32xf32, #tpu.memory_space<vmem>>, %arg19: memref<1x32xf32, #tpu.memory_space<vmem>>, %arg20: memref<32x96xbf16, #tpu.memory_space<vmem>>, %arg21: memref<1x96xf32, #tpu.memory_space<vmem>>, %arg22: memref<32x32xbf16, #tpu.memory_space<vmem>>, %arg23: memref<1x32xf32, #tpu.memory_space<vmem>>, %arg24: memref<1x32xf32, #tpu.memory_space<vmem>>, %arg25: memref<1x32xf32, #tpu.memory_space<vmem>>, %arg26: memref<32x128xbf16, #tpu.memory_space<vmem>>, %arg27: memref<1x128xf32, #tpu.memory_space<vmem>>, %arg28: memref<128x32xbf16, #tpu.memory_space<vmem>>, %arg29: memref<1x32xf32, #tpu.memory_space<vmem>>, %arg30: memref<1x32xf32, #tpu.memory_space<vmem>>, %arg31: memref<1x32xf32, #tpu.memory_space<vmem>>, %arg32: memref<32x128xbf16, #tpu.memory_space<vmem>>, %arg33: memref<1x128xf32, #tpu.memory_space<vmem>>, %arg34: memref<1x8x128xf32, #tpu.memory_space<vmem>>, %arg35: memref<16x32xf32, #tpu.memory_space<vmem>>, %arg36: memref<8x32xf32, #tpu.memory_space<vmem>>) attributes {dimension_semantics = [], scalar_prefetch = 0 : i64, scratch_operands = 2 : i64, tpu.core_type = #tpu.core_type<tc>} {
    %c0 = arith.constant 0 : index
    %c0_0 = arith.constant 0 : index
    %c0_1 = arith.constant 0 : index
    %0 = vector.load %arg0[%c0, %c0_0, %c0_1] : memref<1x8x256xf32, #tpu.memory_space<vmem>>, vector<1x8x256xf32>
    %1 = vector.shape_cast %0 : vector<1x8x256xf32> to vector<8x256xf32>
    %c0_2 = arith.constant 0 : index
    %c0_3 = arith.constant 0 : index
    %2 = vector.load %arg2[%c0_2, %c0_3] : memref<256x32xbf16, #tpu.memory_space<vmem>>, vector<256x32xbf16>
    %3 = arith.truncf %1 : vector<8x256xf32> to vector<8x256xbf16>
    %cst = arith.constant dense<0.000000e+00> : vector<8x32xf32>
    %4 = tpu.matmul %3, %2, %cst {dimension_numbers = #tpu.dot_dimension_numbers<[1], [0], [0], [1], [0, 0, 1, 1], [], []>} : vector<8x256xbf16>, vector<256x32xbf16>, vector<8x32xf32> -> vector<8x32xf32>
    %c0_4 = arith.constant 0 : index
    %c0_5 = arith.constant 0 : index
    %5 = vector.load %arg3[%c0_4, %c0_5] : memref<1x32xf32, #tpu.memory_space<vmem>>, vector<1x32xf32>
    %6 = vector.broadcast %5 : vector<1x32xf32> to vector<8x32xf32>
    %7 = arith.addf %4, %6 : vector<8x32xf32>
    %cst_6 = arith.constant 0.000000e+00 : f32
    %8 = vector.broadcast %cst_6 : f32 to vector<16x32xf32>
    %c0_7 = arith.constant 0 : index
    %c0_8 = arith.constant 0 : index
    %9 = vector.load %arg35[%c0_7, %c0_8] : memref<16x32xf32, #tpu.memory_space<vmem>>, vector<16x32xf32>
    tpu.vector_store %arg35[%c0_7, %c0_8], %8 {strides = array<i32>} : memref<16x32xf32, #tpu.memory_space<vmem>>, vector<16x32xf32>,
    %c0_9 = arith.constant 0 : index
    %c0_10 = arith.constant 0 : index
    %10 = vector.load %arg4[%c0_9, %c0_10] : memref<1x32xf32, #tpu.memory_space<vmem>>, vector<1x32xf32>
    %c0_11 = arith.constant 0 : index
    %c0_12 = arith.constant 0 : index
    %11 = vector.load %arg5[%c0_11, %c0_12] : memref<5x32xf32, #tpu.memory_space<vmem>>, vector<1x32xf32>
    %12 = arith.addf %10, %11 : vector<1x32xf32>
    %c1 = arith.constant 1 : index
    %c0_13 = arith.constant 0 : index
    %13 = vector.load %arg5[%c1, %c0_13] : memref<5x32xf32, #tpu.memory_space<vmem>>, vector<4x32xf32>
    %c0_14 = arith.constant 0 : index
    %c0_15 = arith.constant 0 : index
    %14 = vector.load %arg35[%c0_14, %c0_15] : memref<16x32xf32, #tpu.memory_space<vmem>>, vector<1x32xf32>
    tpu.vector_store %arg35[%c0_14, %c0_15], %12 {strides = array<i32>} : memref<16x32xf32, #tpu.memory_space<vmem>>, vector<1x32xf32>,
    %15 = vector.extract_strided_slice %7 {offsets = [0, 0], sizes = [4, 32], strides = [1, 1]} : vector<8x32xf32> to vector<4x32xf32>
    %16 = arith.addf %15, %13 : vector<4x32xf32>
    %c1_16 = arith.constant 1 : index
    %c0_17 = arith.constant 0 : index
    %17 = vector.load %arg35[%c1_16, %c0_17] : memref<16x32xf32, #tpu.memory_space<vmem>>, vector<4x32xf32>
    tpu.vector_store %arg35[%c1_16, %c0_17], %16 {strides = array<i32>} : memref<16x32xf32, #tpu.memory_space<vmem>>, vector<4x32xf32>,
    %c5 = arith.constant 5 : index
    %c0_18 = arith.constant 0 : index
    %18 = vector.load %arg35[%c5, %c0_18] : memref<16x32xf32, #tpu.memory_space<vmem>>, vector<1x32xf32>
    tpu.vector_store %arg35[%c5, %c0_18], %12 {strides = array<i32>} : memref<16x32xf32, #tpu.memory_space<vmem>>, vector<1x32xf32>,
    %19 = vector.extract_strided_slice %7 {offsets = [4, 0], sizes = [4, 32], strides = [1, 1]} : vector<8x32xf32> to vector<4x32xf32>
    %20 = arith.addf %19, %13 : vector<4x32xf32>
    %c6 = arith.constant 6 : index
    %c0_19 = arith.constant 0 : index
    %21 = vector.load %arg35[%c6, %c0_19] : memref<16x32xf32, #tpu.memory_space<vmem>>, vector<4x32xf32>
    tpu.vector_store %arg35[%c6, %c0_19], %20 {strides = array<i32>} : memref<16x32xf32, #tpu.memory_space<vmem>>, vector<4x32xf32>,
    %c0_20 = arith.constant 0 : index
    %c0_21 = arith.constant 0 : index
    %22 = vector.load %arg35[%c0_20, %c0_21] : memref<16x32xf32, #tpu.memory_space<vmem>>, vector<16x32xf32>
    %c0_22 = arith.constant 0 : index
    %c0_23 = arith.constant 0 : index
    %23 = vector.load %arg1[%c0_22, %c0_23] : memref<16x16xf32, #tpu.memory_space<vmem>>, vector<16x16xf32>
    %c0_24 = arith.constant 0 : index
    %c0_25 = arith.constant 0 : index
    %24 = vector.load %arg6[%c0_24, %c0_25] : memref<1x32xf32, #tpu.memory_space<vmem>>, vector<1x32xf32>
    %c0_26 = arith.constant 0 : index
    %c0_27 = arith.constant 0 : index
    %25 = vector.load %arg7[%c0_26, %c0_27] : memref<1x32xf32, #tpu.memory_space<vmem>>, vector<1x32xf32>
    %cst_28 = arith.constant dense<0.000000e+00> : vector<16xf32>
    %26 = vector.multi_reduction <add>, %22, %cst_28 [1] : vector<16x32xf32> to vector<16xf32>
    %27 = vector.shape_cast %26 : vector<16xf32> to vector<16x1xf32>
    %cst_29 = arith.constant 3.200000e+01 : f32
    %28 = vector.broadcast %cst_29 : f32 to vector<16x1xf32>
    %29 = arith.divf %27, %28 : vector<16x1xf32>
    %30 = vector.broadcast %29 : vector<16x1xf32> to vector<16x32xf32>
    %31 = arith.subf %22, %30 : vector<16x32xf32>
    %32 = arith.mulf %31, %31 : vector<16x32xf32>
    %cst_30 = arith.constant dense<0.000000e+00> : vector<16xf32>
    %33 = vector.multi_reduction <add>, %32, %cst_30 [1] : vector<16x32xf32> to vector<16xf32>
    %34 = vector.shape_cast %33 : vector<16xf32> to vector<16x1xf32>
    %cst_31 = arith.constant 3.200000e+01 : f32
    %35 = vector.broadcast %cst_31 : f32 to vector<16x1xf32>
    %36 = arith.divf %34, %35 : vector<16x1xf32>
    %cst_32 = arith.constant 9.99999974E-6 : f32
    %37 = vector.broadcast %cst_32 : f32 to vector<16x1xf32>
    %38 = arith.addf %36, %37 : vector<16x1xf32>
    %39 = math.rsqrt %38 : vector<16x1xf32>
    %40 = vector.broadcast %39 : vector<16x1xf32> to vector<16x32xf32>
    %41 = arith.mulf %31, %40 : vector<16x32xf32>
    %42 = vector.broadcast %24 : vector<1x32xf32> to vector<16x32xf32>
    %43 = arith.mulf %41, %42 : vector<16x32xf32>
    %44 = vector.broadcast %25 : vector<1x32xf32> to vector<16x32xf32>
    %45 = arith.addf %43, %44 : vector<16x32xf32>
    %c0_33 = arith.constant 0 : index
    %c0_34 = arith.constant 0 : index
    %46 = vector.load %arg8[%c0_33, %c0_34] : memref<32x96xbf16, #tpu.memory_space<vmem>>, vector<32x96xbf16>
    %47 = arith.truncf %45 : vector<16x32xf32> to vector<16x32xbf16>
    %cst_35 = arith.constant dense<0.000000e+00> : vector<16x96xf32>
    %48 = tpu.matmul %47, %46, %cst_35 {dimension_numbers = #tpu.dot_dimension_numbers<[1], [0], [0], [1], [0, 0, 1, 1], [], []>} : vector<16x32xbf16>, vector<32x96xbf16>, vector<16x96xf32> -> vector<16x96xf32>
    %c0_36 = arith.constant 0 : index
    %c0_37 = arith.constant 0 : index
    %49 = vector.load %arg9[%c0_36, %c0_37] : memref<1x96xf32, #tpu.memory_space<vmem>>, vector<1x96xf32>
    %50 = vector.broadcast %49 : vector<1x96xf32> to vector<16x96xf32>
    %51 = arith.addf %48, %50 : vector<16x96xf32>
    %52 = vector.extract_strided_slice %51 {offsets = [0, 0], sizes = [16, 32], strides = [1, 1]} : vector<16x96xf32> to vector<16x32xf32>
    %53 = vector.extract_strided_slice %51 {offsets = [0, 32], sizes = [16, 32], strides = [1, 1]} : vector<16x96xf32> to vector<16x32xf32>
    %54 = tpu.transpose %53, [1, 0] : vector<16x32xf32> -> vector<32x16xf32>
    %55 = vector.extract_strided_slice %51 {offsets = [0, 64], sizes = [16, 32], strides = [1, 1]} : vector<16x96xf32> to vector<16x32xf32>
    %56 = vector.extract_strided_slice %52 {offsets = [0, 0], sizes = [16, 8], strides = [1, 1]} : vector<16x32xf32> to vector<16x8xf32>
    %57 = arith.truncf %56 : vector<16x8xf32> to vector<16x8xbf16>
    %58 = vector.extract_strided_slice %54 {offsets = [0, 0], sizes = [8, 16], strides = [1, 1]} : vector<32x16xf32> to vector<8x16xf32>
    %59 = arith.truncf %58 : vector<8x16xf32> to vector<8x16xbf16>
    %60 = vector.extract_strided_slice %55 {offsets = [0, 0], sizes = [16, 8], strides = [1, 1]} : vector<16x32xf32> to vector<16x8xf32>
    %61 = arith.truncf %60 : vector<16x8xf32> to vector<16x8xbf16>
    %cst_38 = arith.constant dense<0.000000e+00> : vector<16x16xf32>
    %62 = tpu.matmul %57, %59, %cst_38 {dimension_numbers = #tpu.dot_dimension_numbers<[1], [0], [0], [1], [0, 0, 1, 1], [], []>} : vector<16x8xbf16>, vector<8x16xbf16>, vector<16x16xf32> -> vector<16x16xf32>
    %cst_39 = arith.constant 0.353553385 : f32
    %63 = vector.broadcast %cst_39 : f32 to vector<16x16xf32>
    %64 = arith.mulf %62, %63 : vector<16x16xf32>
    %65 = arith.addf %64, %23 : vector<16x16xf32>
    %cst_40 = arith.constant dense<0xFF800000> : vector<16xf32>
    %66 = vector.multi_reduction <maximumf>, %65, %cst_40 [1] : vector<16x16xf32> to vector<16xf32>
    %67 = vector.shape_cast %66 : vector<16xf32> to vector<16x1xf32>
    %68 = vector.broadcast %67 : vector<16x1xf32> to vector<16x16xf32>
    %69 = arith.subf %65, %68 : vector<16x16xf32>
    %70 = math.exp %69 : vector<16x16xf32>
    %cst_41 = arith.constant dense<0.000000e+00> : vector<16xf32>
    %71 = vector.multi_reduction <add>, %70, %cst_41 [1] : vector<16x16xf32> to vector<16xf32>
    %72 = vector.shape_cast %71 : vector<16xf32> to vector<16x1xf32>
    %73 = tpu.reciprocal %72 {approx = true} : vector<16x1xf32> -> vector<16x1xf32>
    %74 = vector.broadcast %73 : vector<16x1xf32> to vector<16x16xf32>
    %75 = arith.mulf %70, %74 : vector<16x16xf32>
    %76 = arith.truncf %75 : vector<16x16xf32> to vector<16x16xbf16>
    %cst_42 = arith.constant dense<0.000000e+00> : vector<16x8xf32>
    %77 = tpu.matmul %76, %61, %cst_42 {dimension_numbers = #tpu.dot_dimension_numbers<[1], [0], [0], [1], [0, 0, 1, 1], [], []>} : vector<16x16xbf16>, vector<16x8xbf16>, vector<16x8xf32> -> vector<16x8xf32>
    %78 = vector.extract_strided_slice %52 {offsets = [0, 8], sizes = [16, 8], strides = [1, 1]} : vector<16x32xf32> to vector<16x8xf32>
    %79 = arith.truncf %78 : vector<16x8xf32> to vector<16x8xbf16>
    %80 = vector.extract_strided_slice %54 {offsets = [8, 0], sizes = [8, 16], strides = [1, 1]} : vector<32x16xf32> to vector<8x16xf32>
    %81 = arith.truncf %80 : vector<8x16xf32> to vector<8x16xbf16>
    %82 = vector.extract_strided_slice %55 {offsets = [0, 8], sizes = [16, 8], strides = [1, 1]} : vector<16x32xf32> to vector<16x8xf32>
    %83 = arith.truncf %82 : vector<16x8xf32> to vector<16x8xbf16>
    %cst_43 = arith.constant dense<0.000000e+00> : vector<16x16xf32>
    %84 = tpu.matmul %79, %81, %cst_43 {dimension_numbers = #tpu.dot_dimension_numbers<[1], [0], [0], [1], [0, 0, 1, 1], [], []>} : vector<16x8xbf16>, vector<8x16xbf16>, vector<16x16xf32> -> vector<16x16xf32>
    %cst_44 = arith.constant 0.353553385 : f32
    %85 = vector.broadcast %cst_44 : f32 to vector<16x16xf32>
    %86 = arith.mulf %84, %85 : vector<16x16xf32>
    %87 = arith.addf %86, %23 : vector<16x16xf32>
    %cst_45 = arith.constant dense<0xFF800000> : vector<16xf32>
    %88 = vector.multi_reduction <maximumf>, %87, %cst_45 [1] : vector<16x16xf32> to vector<16xf32>
    %89 = vector.shape_cast %88 : vector<16xf32> to vector<16x1xf32>
    %90 = vector.broadcast %89 : vector<16x1xf32> to vector<16x16xf32>
    %91 = arith.subf %87, %90 : vector<16x16xf32>
    %92 = math.exp %91 : vector<16x16xf32>
    %cst_46 = arith.constant dense<0.000000e+00> : vector<16xf32>
    %93 = vector.multi_reduction <add>, %92, %cst_46 [1] : vector<16x16xf32> to vector<16xf32>
    %94 = vector.shape_cast %93 : vector<16xf32> to vector<16x1xf32>
    %95 = tpu.reciprocal %94 {approx = true} : vector<16x1xf32> -> vector<16x1xf32>
    %96 = vector.broadcast %95 : vector<16x1xf32> to vector<16x16xf32>
    %97 = arith.mulf %92, %96 : vector<16x16xf32>
    %98 = arith.truncf %97 : vector<16x16xf32> to vector<16x16xbf16>
    %cst_47 = arith.constant dense<0.000000e+00> : vector<16x8xf32>
    %99 = tpu.matmul %98, %83, %cst_47 {dimension_numbers = #tpu.dot_dimension_numbers<[1], [0], [0], [1], [0, 0, 1, 1], [], []>} : vector<16x16xbf16>, vector<16x8xbf16>, vector<16x8xf32> -> vector<16x8xf32>
    %100 = vector.extract_strided_slice %52 {offsets = [0, 16], sizes = [16, 8], strides = [1, 1]} : vector<16x32xf32> to vector<16x8xf32>
    %101 = arith.truncf %100 : vector<16x8xf32> to vector<16x8xbf16>
    %102 = vector.extract_strided_slice %54 {offsets = [16, 0], sizes = [8, 16], strides = [1, 1]} : vector<32x16xf32> to vector<8x16xf32>
    %103 = arith.truncf %102 : vector<8x16xf32> to vector<8x16xbf16>
    %104 = vector.extract_strided_slice %55 {offsets = [0, 16], sizes = [16, 8], strides = [1, 1]} : vector<16x32xf32> to vector<16x8xf32>
    %105 = arith.truncf %104 : vector<16x8xf32> to vector<16x8xbf16>
    %cst_48 = arith.constant dense<0.000000e+00> : vector<16x16xf32>
    %106 = tpu.matmul %101, %103, %cst_48 {dimension_numbers = #tpu.dot_dimension_numbers<[1], [0], [0], [1], [0, 0, 1, 1], [], []>} : vector<16x8xbf16>, vector<8x16xbf16>, vector<16x16xf32> -> vector<16x16xf32>
    %cst_49 = arith.constant 0.353553385 : f32
    %107 = vector.broadcast %cst_49 : f32 to vector<16x16xf32>
    %108 = arith.mulf %106, %107 : vector<16x16xf32>
    %109 = arith.addf %108, %23 : vector<16x16xf32>
    %cst_50 = arith.constant dense<0xFF800000> : vector<16xf32>
    %110 = vector.multi_reduction <maximumf>, %109, %cst_50 [1] : vector<16x16xf32> to vector<16xf32>
    %111 = vector.shape_cast %110 : vector<16xf32> to vector<16x1xf32>
    %112 = vector.broadcast %111 : vector<16x1xf32> to vector<16x16xf32>
    %113 = arith.subf %109, %112 : vector<16x16xf32>
    %114 = math.exp %113 : vector<16x16xf32>
    %cst_51 = arith.constant dense<0.000000e+00> : vector<16xf32>
    %115 = vector.multi_reduction <add>, %114, %cst_51 [1] : vector<16x16xf32> to vector<16xf32>
    %116 = vector.shape_cast %115 : vector<16xf32> to vector<16x1xf32>
    %117 = tpu.reciprocal %116 {approx = true} : vector<16x1xf32> -> vector<16x1xf32>
    %118 = vector.broadcast %117 : vector<16x1xf32> to vector<16x16xf32>
    %119 = arith.mulf %114, %118 : vector<16x16xf32>
    %120 = arith.truncf %119 : vector<16x16xf32> to vector<16x16xbf16>
    %cst_52 = arith.constant dense<0.000000e+00> : vector<16x8xf32>
    %121 = tpu.matmul %120, %105, %cst_52 {dimension_numbers = #tpu.dot_dimension_numbers<[1], [0], [0], [1], [0, 0, 1, 1], [], []>} : vector<16x16xbf16>, vector<16x8xbf16>, vector<16x8xf32> -> vector<16x8xf32>
    %122 = vector.extract_strided_slice %52 {offsets = [0, 24], sizes = [16, 8], strides = [1, 1]} : vector<16x32xf32> to vector<16x8xf32>
    %123 = arith.truncf %122 : vector<16x8xf32> to vector<16x8xbf16>
    %124 = vector.extract_strided_slice %54 {offsets = [24, 0], sizes = [8, 16], strides = [1, 1]} : vector<32x16xf32> to vector<8x16xf32>
    %125 = arith.truncf %124 : vector<8x16xf32> to vector<8x16xbf16>
    %126 = vector.extract_strided_slice %55 {offsets = [0, 24], sizes = [16, 8], strides = [1, 1]} : vector<16x32xf32> to vector<16x8xf32>
    %127 = arith.truncf %126 : vector<16x8xf32> to vector<16x8xbf16>
    %cst_53 = arith.constant dense<0.000000e+00> : vector<16x16xf32>
    %128 = tpu.matmul %123, %125, %cst_53 {dimension_numbers = #tpu.dot_dimension_numbers<[1], [0], [0], [1], [0, 0, 1, 1], [], []>} : vector<16x8xbf16>, vector<8x16xbf16>, vector<16x16xf32> -> vector<16x16xf32>
    %cst_54 = arith.constant 0.353553385 : f32
    %129 = vector.broadcast %cst_54 : f32 to vector<16x16xf32>
    %130 = arith.mulf %128, %129 : vector<16x16xf32>
    %131 = arith.addf %130, %23 : vector<16x16xf32>
    %cst_55 = arith.constant dense<0xFF800000> : vector<16xf32>
    %132 = vector.multi_reduction <maximumf>, %131, %cst_55 [1] : vector<16x16xf32> to vector<16xf32>
    %133 = vector.shape_cast %132 : vector<16xf32> to vector<16x1xf32>
    %134 = vector.broadcast %133 : vector<16x1xf32> to vector<16x16xf32>
    %135 = arith.subf %131, %134 : vector<16x16xf32>
    %136 = math.exp %135 : vector<16x16xf32>
    %cst_56 = arith.constant dense<0.000000e+00> : vector<16xf32>
    %137 = vector.multi_reduction <add>, %136, %cst_56 [1] : vector<16x16xf32> to vector<16xf32>
    %138 = vector.shape_cast %137 : vector<16xf32> to vector<16x1xf32>
    %139 = tpu.reciprocal %138 {approx = true} : vector<16x1xf32> -> vector<16x1xf32>
    %140 = vector.broadcast %139 : vector<16x1xf32> to vector<16x16xf32>
    %141 = arith.mulf %136, %140 : vector<16x16xf32>
    %142 = arith.truncf %141 : vector<16x16xf32> to vector<16x16xbf16>
    %cst_57 = arith.constant dense<0.000000e+00> : vector<16x8xf32>
    %143 = tpu.matmul %142, %127, %cst_57 {dimension_numbers = #tpu.dot_dimension_numbers<[1], [0], [0], [1], [0, 0, 1, 1], [], []>} : vector<16x16xbf16>, vector<16x8xbf16>, vector<16x8xf32> -> vector<16x8xf32>
    %144 = tpu.concatenate %77, %99, %121, %143 in 1 : vector<16x8xf32>, vector<16x8xf32>, vector<16x8xf32>, vector<16x8xf32> -> vector<16x32xf32>
    %c0_58 = arith.constant 0 : index
    %c0_59 = arith.constant 0 : index
    %145 = vector.load %arg10[%c0_58, %c0_59] : memref<32x32xbf16, #tpu.memory_space<vmem>>, vector<32x32xbf16>
    %146 = arith.truncf %144 : vector<16x32xf32> to vector<16x32xbf16>
    %cst_60 = arith.constant dense<0.000000e+00> : vector<16x32xf32>
    %147 = tpu.matmul %146, %145, %cst_60 {dimension_numbers = #tpu.dot_dimension_numbers<[1], [0], [0], [1], [0, 0, 1, 1], [], []>} : vector<16x32xbf16>, vector<32x32xbf16>, vector<16x32xf32> -> vector<16x32xf32>
    %148 = arith.addf %22, %147 : vector<16x32xf32>
    %c0_61 = arith.constant 0 : index
    %c0_62 = arith.constant 0 : index
    %149 = vector.load %arg11[%c0_61, %c0_62] : memref<1x32xf32, #tpu.memory_space<vmem>>, vector<1x32xf32>
    %150 = vector.broadcast %149 : vector<1x32xf32> to vector<16x32xf32>
    %151 = arith.addf %148, %150 : vector<16x32xf32>
    %c0_63 = arith.constant 0 : index
    %c0_64 = arith.constant 0 : index
    %152 = vector.load %arg12[%c0_63, %c0_64] : memref<1x32xf32, #tpu.memory_space<vmem>>, vector<1x32xf32>
    %c0_65 = arith.constant 0 : index
    %c0_66 = arith.constant 0 : index
    %153 = vector.load %arg13[%c0_65, %c0_66] : memref<1x32xf32, #tpu.memory_space<vmem>>, vector<1x32xf32>
    %cst_67 = arith.constant dense<0.000000e+00> : vector<16xf32>
    %154 = vector.multi_reduction <add>, %151, %cst_67 [1] : vector<16x32xf32> to vector<16xf32>
    %155 = vector.shape_cast %154 : vector<16xf32> to vector<16x1xf32>
    %cst_68 = arith.constant 3.200000e+01 : f32
    %156 = vector.broadcast %cst_68 : f32 to vector<16x1xf32>
    %157 = arith.divf %155, %156 : vector<16x1xf32>
    %158 = vector.broadcast %157 : vector<16x1xf32> to vector<16x32xf32>
    %159 = arith.subf %151, %158 : vector<16x32xf32>
    %160 = arith.mulf %159, %159 : vector<16x32xf32>
    %cst_69 = arith.constant dense<0.000000e+00> : vector<16xf32>
    %161 = vector.multi_reduction <add>, %160, %cst_69 [1] : vector<16x32xf32> to vector<16xf32>
    %162 = vector.shape_cast %161 : vector<16xf32> to vector<16x1xf32>
    %cst_70 = arith.constant 3.200000e+01 : f32
    %163 = vector.broadcast %cst_70 : f32 to vector<16x1xf32>
    %164 = arith.divf %162, %163 : vector<16x1xf32>
    %cst_71 = arith.constant 9.99999974E-6 : f32
    %165 = vector.broadcast %cst_71 : f32 to vector<16x1xf32>
    %166 = arith.addf %164, %165 : vector<16x1xf32>
    %167 = math.rsqrt %166 : vector<16x1xf32>
    %168 = vector.broadcast %167 : vector<16x1xf32> to vector<16x32xf32>
    %169 = arith.mulf %159, %168 : vector<16x32xf32>
    %170 = vector.broadcast %152 : vector<1x32xf32> to vector<16x32xf32>
    %171 = arith.mulf %169, %170 : vector<16x32xf32>
    %172 = vector.broadcast %153 : vector<1x32xf32> to vector<16x32xf32>
    %173 = arith.addf %171, %172 : vector<16x32xf32>
    %c0_72 = arith.constant 0 : index
    %c0_73 = arith.constant 0 : index
    %174 = vector.load %arg14[%c0_72, %c0_73] : memref<32x128xbf16, #tpu.memory_space<vmem>>, vector<32x128xbf16>
    %175 = arith.truncf %173 : vector<16x32xf32> to vector<16x32xbf16>
    %cst_74 = arith.constant dense<0.000000e+00> : vector<16x128xf32>
    %176 = tpu.matmul %175, %174, %cst_74 {dimension_numbers = #tpu.dot_dimension_numbers<[1], [0], [0], [1], [0, 0, 1, 1], [], []>} : vector<16x32xbf16>, vector<32x128xbf16>, vector<16x128xf32> -> vector<16x128xf32>
    %c0_75 = arith.constant 0 : index
    %c0_76 = arith.constant 0 : index
    %177 = vector.load %arg15[%c0_75, %c0_76] : memref<1x128xf32, #tpu.memory_space<vmem>>, vector<1x128xf32>
    %178 = vector.broadcast %177 : vector<1x128xf32> to vector<16x128xf32>
    %179 = arith.addf %176, %178 : vector<16x128xf32>
    %cst_77 = arith.constant 5.000000e-01 : f32
    %180 = vector.broadcast %cst_77 : f32 to vector<16x128xf32>
    %181 = arith.mulf %180, %179 : vector<16x128xf32>
    %cst_78 = arith.constant 4.471500e-02 : f32
    %182 = vector.broadcast %cst_78 : f32 to vector<16x128xf32>
    %183 = arith.mulf %182, %179 : vector<16x128xf32>
    %184 = arith.mulf %183, %179 : vector<16x128xf32>
    %185 = arith.mulf %184, %179 : vector<16x128xf32>
    %186 = arith.addf %179, %185 : vector<16x128xf32>
    %cst_79 = arith.constant 0.797884583 : f32
    %187 = vector.broadcast %cst_79 : f32 to vector<16x128xf32>
    %188 = arith.mulf %187, %186 : vector<16x128xf32>
    %189 = math.tanh %188 : vector<16x128xf32>
    %cst_80 = arith.constant 1.000000e+00 : f32
    %190 = vector.broadcast %cst_80 : f32 to vector<16x128xf32>
    %191 = arith.addf %190, %189 : vector<16x128xf32>
    %192 = arith.mulf %181, %191 : vector<16x128xf32>
    %c0_81 = arith.constant 0 : index
    %c0_82 = arith.constant 0 : index
    %193 = vector.load %arg16[%c0_81, %c0_82] : memref<128x32xbf16, #tpu.memory_space<vmem>>, vector<128x32xbf16>
    %194 = arith.truncf %192 : vector<16x128xf32> to vector<16x128xbf16>
    %cst_83 = arith.constant dense<0.000000e+00> : vector<16x32xf32>
    %195 = tpu.matmul %194, %193, %cst_83 {dimension_numbers = #tpu.dot_dimension_numbers<[1], [0], [0], [1], [0, 0, 1, 1], [], []>} : vector<16x128xbf16>, vector<128x32xbf16>, vector<16x32xf32> -> vector<16x32xf32>
    %196 = arith.addf %151, %195 : vector<16x32xf32>
    %c0_84 = arith.constant 0 : index
    %c0_85 = arith.constant 0 : index
    %197 = vector.load %arg17[%c0_84, %c0_85] : memref<1x32xf32, #tpu.memory_space<vmem>>, vector<1x32xf32>
    %198 = vector.broadcast %197 : vector<1x32xf32> to vector<16x32xf32>
    %199 = arith.addf %196, %198 : vector<16x32xf32>
    %c0_86 = arith.constant 0 : index
    %c0_87 = arith.constant 0 : index
    %200 = vector.load %arg18[%c0_86, %c0_87] : memref<1x32xf32, #tpu.memory_space<vmem>>, vector<1x32xf32>
    %c0_88 = arith.constant 0 : index
    %c0_89 = arith.constant 0 : index
    %201 = vector.load %arg19[%c0_88, %c0_89] : memref<1x32xf32, #tpu.memory_space<vmem>>, vector<1x32xf32>
    %cst_90 = arith.constant dense<0.000000e+00> : vector<16xf32>
    %202 = vector.multi_reduction <add>, %199, %cst_90 [1] : vector<16x32xf32> to vector<16xf32>
    %203 = vector.shape_cast %202 : vector<16xf32> to vector<16x1xf32>
    %cst_91 = arith.constant 3.200000e+01 : f32
    %204 = vector.broadcast %cst_91 : f32 to vector<16x1xf32>
    %205 = arith.divf %203, %204 : vector<16x1xf32>
    %206 = vector.broadcast %205 : vector<16x1xf32> to vector<16x32xf32>
    %207 = arith.subf %199, %206 : vector<16x32xf32>
    %208 = arith.mulf %207, %207 : vector<16x32xf32>
    %cst_92 = arith.constant dense<0.000000e+00> : vector<16xf32>
    %209 = vector.multi_reduction <add>, %208, %cst_92 [1] : vector<16x32xf32> to vector<16xf32>
    %210 = vector.shape_cast %209 : vector<16xf32> to vector<16x1xf32>
    %cst_93 = arith.constant 3.200000e+01 : f32
    %211 = vector.broadcast %cst_93 : f32 to vector<16x1xf32>
    %212 = arith.divf %210, %211 : vector<16x1xf32>
    %cst_94 = arith.constant 9.99999974E-6 : f32
    %213 = vector.broadcast %cst_94 : f32 to vector<16x1xf32>
    %214 = arith.addf %212, %213 : vector<16x1xf32>
    %215 = math.rsqrt %214 : vector<16x1xf32>
    %216 = vector.broadcast %215 : vector<16x1xf32> to vector<16x32xf32>
    %217 = arith.mulf %207, %216 : vector<16x32xf32>
    %218 = vector.broadcast %200 : vector<1x32xf32> to vector<16x32xf32>
    %219 = arith.mulf %217, %218 : vector<16x32xf32>
    %220 = vector.broadcast %201 : vector<1x32xf32> to vector<16x32xf32>
    %221 = arith.addf %219, %220 : vector<16x32xf32>
    %c0_95 = arith.constant 0 : index
    %c0_96 = arith.constant 0 : index
    %222 = vector.load %arg20[%c0_95, %c0_96] : memref<32x96xbf16, #tpu.memory_space<vmem>>, vector<32x96xbf16>
    %223 = arith.truncf %221 : vector<16x32xf32> to vector<16x32xbf16>
    %cst_97 = arith.constant dense<0.000000e+00> : vector<16x96xf32>
    %224 = tpu.matmul %223, %222, %cst_97 {dimension_numbers = #tpu.dot_dimension_numbers<[1], [0], [0], [1], [0, 0, 1, 1], [], []>} : vector<16x32xbf16>, vector<32x96xbf16>, vector<16x96xf32> -> vector<16x96xf32>
    %c0_98 = arith.constant 0 : index
    %c0_99 = arith.constant 0 : index
    %225 = vector.load %arg21[%c0_98, %c0_99] : memref<1x96xf32, #tpu.memory_space<vmem>>, vector<1x96xf32>
    %226 = vector.broadcast %225 : vector<1x96xf32> to vector<16x96xf32>
    %227 = arith.addf %224, %226 : vector<16x96xf32>
    %228 = vector.extract_strided_slice %227 {offsets = [0, 0], sizes = [16, 32], strides = [1, 1]} : vector<16x96xf32> to vector<16x32xf32>
    %229 = vector.extract_strided_slice %227 {offsets = [0, 32], sizes = [16, 32], strides = [1, 1]} : vector<16x96xf32> to vector<16x32xf32>
    %230 = tpu.transpose %229, [1, 0] : vector<16x32xf32> -> vector<32x16xf32>
    %231 = vector.extract_strided_slice %227 {offsets = [0, 64], sizes = [16, 32], strides = [1, 1]} : vector<16x96xf32> to vector<16x32xf32>
    %232 = vector.extract_strided_slice %228 {offsets = [0, 0], sizes = [16, 8], strides = [1, 1]} : vector<16x32xf32> to vector<16x8xf32>
    %233 = arith.truncf %232 : vector<16x8xf32> to vector<16x8xbf16>
    %234 = vector.extract_strided_slice %230 {offsets = [0, 0], sizes = [8, 16], strides = [1, 1]} : vector<32x16xf32> to vector<8x16xf32>
    %235 = arith.truncf %234 : vector<8x16xf32> to vector<8x16xbf16>
    %236 = vector.extract_strided_slice %231 {offsets = [0, 0], sizes = [16, 8], strides = [1, 1]} : vector<16x32xf32> to vector<16x8xf32>
    %237 = arith.truncf %236 : vector<16x8xf32> to vector<16x8xbf16>
    %cst_100 = arith.constant dense<0.000000e+00> : vector<16x16xf32>
    %238 = tpu.matmul %233, %235, %cst_100 {dimension_numbers = #tpu.dot_dimension_numbers<[1], [0], [0], [1], [0, 0, 1, 1], [], []>} : vector<16x8xbf16>, vector<8x16xbf16>, vector<16x16xf32> -> vector<16x16xf32>
    %cst_101 = arith.constant 0.353553385 : f32
    %239 = vector.broadcast %cst_101 : f32 to vector<16x16xf32>
    %240 = arith.mulf %238, %239 : vector<16x16xf32>
    %241 = arith.addf %240, %23 : vector<16x16xf32>
    %cst_102 = arith.constant dense<0xFF800000> : vector<16xf32>
    %242 = vector.multi_reduction <maximumf>, %241, %cst_102 [1] : vector<16x16xf32> to vector<16xf32>
    %243 = vector.shape_cast %242 : vector<16xf32> to vector<16x1xf32>
    %244 = vector.broadcast %243 : vector<16x1xf32> to vector<16x16xf32>
    %245 = arith.subf %241, %244 : vector<16x16xf32>
    %246 = math.exp %245 : vector<16x16xf32>
    %cst_103 = arith.constant dense<0.000000e+00> : vector<16xf32>
    %247 = vector.multi_reduction <add>, %246, %cst_103 [1] : vector<16x16xf32> to vector<16xf32>
    %248 = vector.shape_cast %247 : vector<16xf32> to vector<16x1xf32>
    %249 = tpu.reciprocal %248 {approx = true} : vector<16x1xf32> -> vector<16x1xf32>
    %250 = vector.broadcast %249 : vector<16x1xf32> to vector<16x16xf32>
    %251 = arith.mulf %246, %250 : vector<16x16xf32>
    %252 = arith.truncf %251 : vector<16x16xf32> to vector<16x16xbf16>
    %cst_104 = arith.constant dense<0.000000e+00> : vector<16x8xf32>
    %253 = tpu.matmul %252, %237, %cst_104 {dimension_numbers = #tpu.dot_dimension_numbers<[1], [0], [0], [1], [0, 0, 1, 1], [], []>} : vector<16x16xbf16>, vector<16x8xbf16>, vector<16x8xf32> -> vector<16x8xf32>
    %254 = vector.extract_strided_slice %228 {offsets = [0, 8], sizes = [16, 8], strides = [1, 1]} : vector<16x32xf32> to vector<16x8xf32>
    %255 = arith.truncf %254 : vector<16x8xf32> to vector<16x8xbf16>
    %256 = vector.extract_strided_slice %230 {offsets = [8, 0], sizes = [8, 16], strides = [1, 1]} : vector<32x16xf32> to vector<8x16xf32>
    %257 = arith.truncf %256 : vector<8x16xf32> to vector<8x16xbf16>
    %258 = vector.extract_strided_slice %231 {offsets = [0, 8], sizes = [16, 8], strides = [1, 1]} : vector<16x32xf32> to vector<16x8xf32>
    %259 = arith.truncf %258 : vector<16x8xf32> to vector<16x8xbf16>
    %cst_105 = arith.constant dense<0.000000e+00> : vector<16x16xf32>
    %260 = tpu.matmul %255, %257, %cst_105 {dimension_numbers = #tpu.dot_dimension_numbers<[1], [0], [0], [1], [0, 0, 1, 1], [], []>} : vector<16x8xbf16>, vector<8x16xbf16>, vector<16x16xf32> -> vector<16x16xf32>
    %cst_106 = arith.constant 0.353553385 : f32
    %261 = vector.broadcast %cst_106 : f32 to vector<16x16xf32>
    %262 = arith.mulf %260, %261 : vector<16x16xf32>
    %263 = arith.addf %262, %23 : vector<16x16xf32>
    %cst_107 = arith.constant dense<0xFF800000> : vector<16xf32>
    %264 = vector.multi_reduction <maximumf>, %263, %cst_107 [1] : vector<16x16xf32> to vector<16xf32>
    %265 = vector.shape_cast %264 : vector<16xf32> to vector<16x1xf32>
    %266 = vector.broadcast %265 : vector<16x1xf32> to vector<16x16xf32>
    %267 = arith.subf %263, %266 : vector<16x16xf32>
    %268 = math.exp %267 : vector<16x16xf32>
    %cst_108 = arith.constant dense<0.000000e+00> : vector<16xf32>
    %269 = vector.multi_reduction <add>, %268, %cst_108 [1] : vector<16x16xf32> to vector<16xf32>
    %270 = vector.shape_cast %269 : vector<16xf32> to vector<16x1xf32>
    %271 = tpu.reciprocal %270 {approx = true} : vector<16x1xf32> -> vector<16x1xf32>
    %272 = vector.broadcast %271 : vector<16x1xf32> to vector<16x16xf32>
    %273 = arith.mulf %268, %272 : vector<16x16xf32>
    %274 = arith.truncf %273 : vector<16x16xf32> to vector<16x16xbf16>
    %cst_109 = arith.constant dense<0.000000e+00> : vector<16x8xf32>
    %275 = tpu.matmul %274, %259, %cst_109 {dimension_numbers = #tpu.dot_dimension_numbers<[1], [0], [0], [1], [0, 0, 1, 1], [], []>} : vector<16x16xbf16>, vector<16x8xbf16>, vector<16x8xf32> -> vector<16x8xf32>
    %276 = vector.extract_strided_slice %228 {offsets = [0, 16], sizes = [16, 8], strides = [1, 1]} : vector<16x32xf32> to vector<16x8xf32>
    %277 = arith.truncf %276 : vector<16x8xf32> to vector<16x8xbf16>
    %278 = vector.extract_strided_slice %230 {offsets = [16, 0], sizes = [8, 16], strides = [1, 1]} : vector<32x16xf32> to vector<8x16xf32>
    %279 = arith.truncf %278 : vector<8x16xf32> to vector<8x16xbf16>
    %280 = vector.extract_strided_slice %231 {offsets = [0, 16], sizes = [16, 8], strides = [1, 1]} : vector<16x32xf32> to vector<16x8xf32>
    %281 = arith.truncf %280 : vector<16x8xf32> to vector<16x8xbf16>
    %cst_110 = arith.constant dense<0.000000e+00> : vector<16x16xf32>
    %282 = tpu.matmul %277, %279, %cst_110 {dimension_numbers = #tpu.dot_dimension_numbers<[1], [0], [0], [1], [0, 0, 1, 1], [], []>} : vector<16x8xbf16>, vector<8x16xbf16>, vector<16x16xf32> -> vector<16x16xf32>
    %cst_111 = arith.constant 0.353553385 : f32
    %283 = vector.broadcast %cst_111 : f32 to vector<16x16xf32>
    %284 = arith.mulf %282, %283 : vector<16x16xf32>
    %285 = arith.addf %284, %23 : vector<16x16xf32>
    %cst_112 = arith.constant dense<0xFF800000> : vector<16xf32>
    %286 = vector.multi_reduction <maximumf>, %285, %cst_112 [1] : vector<16x16xf32> to vector<16xf32>
    %287 = vector.shape_cast %286 : vector<16xf32> to vector<16x1xf32>
    %288 = vector.broadcast %287 : vector<16x1xf32> to vector<16x16xf32>
    %289 = arith.subf %285, %288 : vector<16x16xf32>
    %290 = math.exp %289 : vector<16x16xf32>
    %cst_113 = arith.constant dense<0.000000e+00> : vector<16xf32>
    %291 = vector.multi_reduction <add>, %290, %cst_113 [1] : vector<16x16xf32> to vector<16xf32>
    %292 = vector.shape_cast %291 : vector<16xf32> to vector<16x1xf32>
    %293 = tpu.reciprocal %292 {approx = true} : vector<16x1xf32> -> vector<16x1xf32>
    %294 = vector.broadcast %293 : vector<16x1xf32> to vector<16x16xf32>
    %295 = arith.mulf %290, %294 : vector<16x16xf32>
    %296 = arith.truncf %295 : vector<16x16xf32> to vector<16x16xbf16>
    %cst_114 = arith.constant dense<0.000000e+00> : vector<16x8xf32>
    %297 = tpu.matmul %296, %281, %cst_114 {dimension_numbers = #tpu.dot_dimension_numbers<[1], [0], [0], [1], [0, 0, 1, 1], [], []>} : vector<16x16xbf16>, vector<16x8xbf16>, vector<16x8xf32> -> vector<16x8xf32>
    %298 = vector.extract_strided_slice %228 {offsets = [0, 24], sizes = [16, 8], strides = [1, 1]} : vector<16x32xf32> to vector<16x8xf32>
    %299 = arith.truncf %298 : vector<16x8xf32> to vector<16x8xbf16>
    %300 = vector.extract_strided_slice %230 {offsets = [24, 0], sizes = [8, 16], strides = [1, 1]} : vector<32x16xf32> to vector<8x16xf32>
    %301 = arith.truncf %300 : vector<8x16xf32> to vector<8x16xbf16>
    %302 = vector.extract_strided_slice %231 {offsets = [0, 24], sizes = [16, 8], strides = [1, 1]} : vector<16x32xf32> to vector<16x8xf32>
    %303 = arith.truncf %302 : vector<16x8xf32> to vector<16x8xbf16>
    %cst_115 = arith.constant dense<0.000000e+00> : vector<16x16xf32>
    %304 = tpu.matmul %299, %301, %cst_115 {dimension_numbers = #tpu.dot_dimension_numbers<[1], [0], [0], [1], [0, 0, 1, 1], [], []>} : vector<16x8xbf16>, vector<8x16xbf16>, vector<16x16xf32> -> vector<16x16xf32>
    %cst_116 = arith.constant 0.353553385 : f32
    %305 = vector.broadcast %cst_116 : f32 to vector<16x16xf32>
    %306 = arith.mulf %304, %305 : vector<16x16xf32>
    %307 = arith.addf %306, %23 : vector<16x16xf32>
    %cst_117 = arith.constant dense<0xFF800000> : vector<16xf32>
    %308 = vector.multi_reduction <maximumf>, %307, %cst_117 [1] : vector<16x16xf32> to vector<16xf32>
    %309 = vector.shape_cast %308 : vector<16xf32> to vector<16x1xf32>
    %310 = vector.broadcast %309 : vector<16x1xf32> to vector<16x16xf32>
    %311 = arith.subf %307, %310 : vector<16x16xf32>
    %312 = math.exp %311 : vector<16x16xf32>
    %cst_118 = arith.constant dense<0.000000e+00> : vector<16xf32>
    %313 = vector.multi_reduction <add>, %312, %cst_118 [1] : vector<16x16xf32> to vector<16xf32>
    %314 = vector.shape_cast %313 : vector<16xf32> to vector<16x1xf32>
    %315 = tpu.reciprocal %314 {approx = true} : vector<16x1xf32> -> vector<16x1xf32>
    %316 = vector.broadcast %315 : vector<16x1xf32> to vector<16x16xf32>
    %317 = arith.mulf %312, %316 : vector<16x16xf32>
    %318 = arith.truncf %317 : vector<16x16xf32> to vector<16x16xbf16>
    %cst_119 = arith.constant dense<0.000000e+00> : vector<16x8xf32>
    %319 = tpu.matmul %318, %303, %cst_119 {dimension_numbers = #tpu.dot_dimension_numbers<[1], [0], [0], [1], [0, 0, 1, 1], [], []>} : vector<16x16xbf16>, vector<16x8xbf16>, vector<16x8xf32> -> vector<16x8xf32>
    %320 = tpu.concatenate %253, %275, %297, %319 in 1 : vector<16x8xf32>, vector<16x8xf32>, vector<16x8xf32>, vector<16x8xf32> -> vector<16x32xf32>
    %c0_120 = arith.constant 0 : index
    %c0_121 = arith.constant 0 : index
    %321 = vector.load %arg22[%c0_120, %c0_121] : memref<32x32xbf16, #tpu.memory_space<vmem>>, vector<32x32xbf16>
    %322 = arith.truncf %320 : vector<16x32xf32> to vector<16x32xbf16>
    %cst_122 = arith.constant dense<0.000000e+00> : vector<16x32xf32>
    %323 = tpu.matmul %322, %321, %cst_122 {dimension_numbers = #tpu.dot_dimension_numbers<[1], [0], [0], [1], [0, 0, 1, 1], [], []>} : vector<16x32xbf16>, vector<32x32xbf16>, vector<16x32xf32> -> vector<16x32xf32>
    %324 = arith.addf %199, %323 : vector<16x32xf32>
    %c0_123 = arith.constant 0 : index
    %c0_124 = arith.constant 0 : index
    %325 = vector.load %arg23[%c0_123, %c0_124] : memref<1x32xf32, #tpu.memory_space<vmem>>, vector<1x32xf32>
    %326 = vector.broadcast %325 : vector<1x32xf32> to vector<16x32xf32>
    %327 = arith.addf %324, %326 : vector<16x32xf32>
    %c0_125 = arith.constant 0 : index
    %c0_126 = arith.constant 0 : index
    %328 = vector.load %arg24[%c0_125, %c0_126] : memref<1x32xf32, #tpu.memory_space<vmem>>, vector<1x32xf32>
    %c0_127 = arith.constant 0 : index
    %c0_128 = arith.constant 0 : index
    %329 = vector.load %arg25[%c0_127, %c0_128] : memref<1x32xf32, #tpu.memory_space<vmem>>, vector<1x32xf32>
    %cst_129 = arith.constant dense<0.000000e+00> : vector<16xf32>
    %330 = vector.multi_reduction <add>, %327, %cst_129 [1] : vector<16x32xf32> to vector<16xf32>
    %331 = vector.shape_cast %330 : vector<16xf32> to vector<16x1xf32>
    %cst_130 = arith.constant 3.200000e+01 : f32
    %332 = vector.broadcast %cst_130 : f32 to vector<16x1xf32>
    %333 = arith.divf %331, %332 : vector<16x1xf32>
    %334 = vector.broadcast %333 : vector<16x1xf32> to vector<16x32xf32>
    %335 = arith.subf %327, %334 : vector<16x32xf32>
    %336 = arith.mulf %335, %335 : vector<16x32xf32>
    %cst_131 = arith.constant dense<0.000000e+00> : vector<16xf32>
    %337 = vector.multi_reduction <add>, %336, %cst_131 [1] : vector<16x32xf32> to vector<16xf32>
    %338 = vector.shape_cast %337 : vector<16xf32> to vector<16x1xf32>
    %cst_132 = arith.constant 3.200000e+01 : f32
    %339 = vector.broadcast %cst_132 : f32 to vector<16x1xf32>
    %340 = arith.divf %338, %339 : vector<16x1xf32>
    %cst_133 = arith.constant 9.99999974E-6 : f32
    %341 = vector.broadcast %cst_133 : f32 to vector<16x1xf32>
    %342 = arith.addf %340, %341 : vector<16x1xf32>
    %343 = math.rsqrt %342 : vector<16x1xf32>
    %344 = vector.broadcast %343 : vector<16x1xf32> to vector<16x32xf32>
    %345 = arith.mulf %335, %344 : vector<16x32xf32>
    %346 = vector.broadcast %328 : vector<1x32xf32> to vector<16x32xf32>
    %347 = arith.mulf %345, %346 : vector<16x32xf32>
    %348 = vector.broadcast %329 : vector<1x32xf32> to vector<16x32xf32>
    %349 = arith.addf %347, %348 : vector<16x32xf32>
    %c0_134 = arith.constant 0 : index
    %c0_135 = arith.constant 0 : index
    %350 = vector.load %arg26[%c0_134, %c0_135] : memref<32x128xbf16, #tpu.memory_space<vmem>>, vector<32x128xbf16>
    %351 = arith.truncf %349 : vector<16x32xf32> to vector<16x32xbf16>
    %cst_136 = arith.constant dense<0.000000e+00> : vector<16x128xf32>
    %352 = tpu.matmul %351, %350, %cst_136 {dimension_numbers = #tpu.dot_dimension_numbers<[1], [0], [0], [1], [0, 0, 1, 1], [], []>} : vector<16x32xbf16>, vector<32x128xbf16>, vector<16x128xf32> -> vector<16x128xf32>
    %c0_137 = arith.constant 0 : index
    %c0_138 = arith.constant 0 : index
    %353 = vector.load %arg27[%c0_137, %c0_138] : memref<1x128xf32, #tpu.memory_space<vmem>>, vector<1x128xf32>
    %354 = vector.broadcast %353 : vector<1x128xf32> to vector<16x128xf32>
    %355 = arith.addf %352, %354 : vector<16x128xf32>
    %cst_139 = arith.constant 5.000000e-01 : f32
    %356 = vector.broadcast %cst_139 : f32 to vector<16x128xf32>
    %357 = arith.mulf %356, %355 : vector<16x128xf32>
    %cst_140 = arith.constant 4.471500e-02 : f32
    %358 = vector.broadcast %cst_140 : f32 to vector<16x128xf32>
    %359 = arith.mulf %358, %355 : vector<16x128xf32>
    %360 = arith.mulf %359, %355 : vector<16x128xf32>
    %361 = arith.mulf %360, %355 : vector<16x128xf32>
    %362 = arith.addf %355, %361 : vector<16x128xf32>
    %cst_141 = arith.constant 0.797884583 : f32
    %363 = vector.broadcast %cst_141 : f32 to vector<16x128xf32>
    %364 = arith.mulf %363, %362 : vector<16x128xf32>
    %365 = math.tanh %364 : vector<16x128xf32>
    %cst_142 = arith.constant 1.000000e+00 : f32
    %366 = vector.broadcast %cst_142 : f32 to vector<16x128xf32>
    %367 = arith.addf %366, %365 : vector<16x128xf32>
    %368 = arith.mulf %357, %367 : vector<16x128xf32>
    %c0_143 = arith.constant 0 : index
    %c0_144 = arith.constant 0 : index
    %369 = vector.load %arg28[%c0_143, %c0_144] : memref<128x32xbf16, #tpu.memory_space<vmem>>, vector<128x32xbf16>
    %370 = arith.truncf %368 : vector<16x128xf32> to vector<16x128xbf16>
    %cst_145 = arith.constant dense<0.000000e+00> : vector<16x32xf32>
    %371 = tpu.matmul %370, %369, %cst_145 {dimension_numbers = #tpu.dot_dimension_numbers<[1], [0], [0], [1], [0, 0, 1, 1], [], []>} : vector<16x128xbf16>, vector<128x32xbf16>, vector<16x32xf32> -> vector<16x32xf32>
    %372 = arith.addf %327, %371 : vector<16x32xf32>
    %c0_146 = arith.constant 0 : index
    %c0_147 = arith.constant 0 : index
    %373 = vector.load %arg29[%c0_146, %c0_147] : memref<1x32xf32, #tpu.memory_space<vmem>>, vector<1x32xf32>
    %374 = vector.broadcast %373 : vector<1x32xf32> to vector<16x32xf32>
    %375 = arith.addf %372, %374 : vector<16x32xf32>
    %cst_148 = arith.constant 0.000000e+00 : f32
    %376 = vector.broadcast %cst_148 : f32 to vector<8x32xf32>
    %c0_149 = arith.constant 0 : index
    %c0_150 = arith.constant 0 : index
    %377 = vector.load %arg36[%c0_149, %c0_150] : memref<8x32xf32, #tpu.memory_space<vmem>>, vector<8x32xf32>
    tpu.vector_store %arg36[%c0_149, %c0_150], %376 {strides = array<i32>} : memref<8x32xf32, #tpu.memory_space<vmem>>, vector<8x32xf32>,
    %378 = vector.extract_strided_slice %375 {offsets = [0, 0], sizes = [1, 32], strides = [1, 1]} : vector<16x32xf32> to vector<1x32xf32>
    %c0_151 = arith.constant 0 : index
    %c0_152 = arith.constant 0 : index
    %379 = vector.load %arg36[%c0_151, %c0_152] : memref<8x32xf32, #tpu.memory_space<vmem>>, vector<1x32xf32>
    tpu.vector_store %arg36[%c0_151, %c0_152], %378 {strides = array<i32>} : memref<8x32xf32, #tpu.memory_space<vmem>>, vector<1x32xf32>,
    %380 = vector.extract_strided_slice %375 {offsets = [5, 0], sizes = [1, 32], strides = [1, 1]} : vector<16x32xf32> to vector<1x32xf32>
    %c1_153 = arith.constant 1 : index
    %c0_154 = arith.constant 0 : index
    %381 = vector.load %arg36[%c1_153, %c0_154] : memref<8x32xf32, #tpu.memory_space<vmem>>, vector<1x32xf32>
    tpu.vector_store %arg36[%c1_153, %c0_154], %380 {strides = array<i32>} : memref<8x32xf32, #tpu.memory_space<vmem>>, vector<1x32xf32>,
    %c0_155 = arith.constant 0 : index
    %c0_156 = arith.constant 0 : index
    %382 = vector.load %arg36[%c0_155, %c0_156] : memref<8x32xf32, #tpu.memory_space<vmem>>, vector<8x32xf32>
    %c0_157 = arith.constant 0 : index
    %c0_158 = arith.constant 0 : index
    %383 = vector.load %arg30[%c0_157, %c0_158] : memref<1x32xf32, #tpu.memory_space<vmem>>, vector<1x32xf32>
    %c0_159 = arith.constant 0 : index
    %c0_160 = arith.constant 0 : index
    %384 = vector.load %arg31[%c0_159, %c0_160] : memref<1x32xf32, #tpu.memory_space<vmem>>, vector<1x32xf32>
    %cst_161 = arith.constant dense<0.000000e+00> : vector<8xf32>
    %385 = vector.multi_reduction <add>, %382, %cst_161 [1] : vector<8x32xf32> to vector<8xf32>
    %386 = vector.shape_cast %385 : vector<8xf32> to vector<8x1xf32>
    %cst_162 = arith.constant 3.200000e+01 : f32
    %387 = vector.broadcast %cst_162 : f32 to vector<8x1xf32>
    %388 = arith.divf %386, %387 : vector<8x1xf32>
    %389 = vector.broadcast %388 : vector<8x1xf32> to vector<8x32xf32>
    %390 = arith.subf %382, %389 : vector<8x32xf32>
    %391 = arith.mulf %390, %390 : vector<8x32xf32>
    %cst_163 = arith.constant dense<0.000000e+00> : vector<8xf32>
    %392 = vector.multi_reduction <add>, %391, %cst_163 [1] : vector<8x32xf32> to vector<8xf32>
    %393 = vector.shape_cast %392 : vector<8xf32> to vector<8x1xf32>
    %cst_164 = arith.constant 3.200000e+01 : f32
    %394 = vector.broadcast %cst_164 : f32 to vector<8x1xf32>
    %395 = arith.divf %393, %394 : vector<8x1xf32>
    %cst_165 = arith.constant 9.99999974E-6 : f32
    %396 = vector.broadcast %cst_165 : f32 to vector<8x1xf32>
    %397 = arith.addf %395, %396 : vector<8x1xf32>
    %398 = math.rsqrt %397 : vector<8x1xf32>
    %399 = vector.broadcast %398 : vector<8x1xf32> to vector<8x32xf32>
    %400 = arith.mulf %390, %399 : vector<8x32xf32>
    %401 = vector.broadcast %383 : vector<1x32xf32> to vector<8x32xf32>
    %402 = arith.mulf %400, %401 : vector<8x32xf32>
    %403 = vector.broadcast %384 : vector<1x32xf32> to vector<8x32xf32>
    %404 = arith.addf %402, %403 : vector<8x32xf32>
    %c0_166 = arith.constant 0 : index
    %c0_167 = arith.constant 0 : index
    %405 = vector.load %arg32[%c0_166, %c0_167] : memref<32x128xbf16, #tpu.memory_space<vmem>>, vector<32x128xbf16>
    %406 = arith.truncf %404 : vector<8x32xf32> to vector<8x32xbf16>
    %cst_168 = arith.constant dense<0.000000e+00> : vector<8x128xf32>
    %407 = tpu.matmul %406, %405, %cst_168 {dimension_numbers = #tpu.dot_dimension_numbers<[1], [0], [0], [1], [0, 0, 1, 1], [], []>} : vector<8x32xbf16>, vector<32x128xbf16>, vector<8x128xf32> -> vector<8x128xf32>
    %c0_169 = arith.constant 0 : index
    %c0_170 = arith.constant 0 : index
    %408 = vector.load %arg33[%c0_169, %c0_170] : memref<1x128xf32, #tpu.memory_space<vmem>>, vector<1x128xf32>
    %409 = vector.broadcast %408 : vector<1x128xf32> to vector<8x128xf32>
    %410 = arith.addf %407, %409 : vector<8x128xf32>
    %411 = vector.shape_cast %410 : vector<8x128xf32> to vector<1x8x128xf32>
    %c0_171 = arith.constant 0 : index
    %c0_172 = arith.constant 0 : index
    %c0_173 = arith.constant 0 : index
    %412 = vector.load %arg34[%c0_171, %c0_172, %c0_173] : memref<1x8x128xf32, #tpu.memory_space<vmem>>, vector<1x8x128xf32>
    tpu.vector_store %arg34[%c0_171, %c0_172, %c0_173], %411 {strides = array<i32>} : memref<1x8x128xf32, #tpu.memory_space<vmem>>, vector<1x8x128xf32>,
    return
  }
}

</mosaic_0001>

<bundles_post_ra>
// kernel: vit_forward.1
= control target key start
LH: loop header
LB: loop body
LE: loop exit
PB: predicated region body
PF: predicated region fallthrough
CT: control target
= control target key end

     0   :  { %s3067_s3 = smov 2   ;;  %s3068_s10 = smov 5   ;;  %vm322_vm0 = vcmask 261120   ;;  %v3070_v21 = vmov 0.0   ;;  %vm329_vm1 = vcmask 253952   ;;  %vm332_vm2 = vcmask 257024   ;;  %s3569_s0 = inlined_call_operand.smem [shape: u32[35], index: -1, kind: input, shape index: {}] }
   0x1   :  { %s3119_s6 = sld [smem:[%s3569_s0 + %s3067_s3]]   ;;  %s3069_s14 = smov 4   ;;  %323 = vst.msk [vmem:[#allocation2] sm:$0xff] %vm322_vm0, %v3070_v21  ;;  %324 = vst.msk [vmem:[#allocation2 + $0x8] sm:$0xff] %vm322_vm0, %v3070_v21  ;;  %2663 = vmatprep.subr.bf16.mxu1 %v3070_v21  ;;  %vm339_vm3 = vcmask 261124   ;;  %vm3073_vm4 = vmmov 0   ;;  %vm504_vm5 = vcmask 1043456  }
   0x2   :  { %s1_s9 = sld [smem:[%s3569_s0]]   ;;  %2341 = vst.msk [vmem:[#allocation3] sm:$0xff] %vm322_vm0, %v3070_v21  ;;  %s3071_s18 = smov 3   ;;  %2667 = vmatprep.mubr.msk.bf16.mxu1 %vm3073_vm4, %v3070_v21  ;;  %vm500_vm6 = vcmask 64512   ;;  %vm553_vm7 = vcmask 130048   ;;  %vm1025_vm8 = vcmask 195584   ;;  %vm2343_vm9 = vcmask 259077  }
   0x3   :  { %s2451_s13 = sld [smem:[%s3569_s0 + %s3068_s10]]   ;;  %s3072_s22 = smov 8  }
   0x4   :  { %s2450_s17 = sld [smem:[%s3569_s0 + %s3069_s14]]   ;;  %s3074_s26 = smov 6  }
   0x5   :  { %s2449_s21 = sld [smem:[%s3569_s0 + %s3071_s18]]   ;;  %s3075_s30 = smov 7  }
   0x6   :  { %s2454_s25 = sld [smem:[%s3569_s0 + %s3072_s22]]   ;;  %s3076_s4 = smov 9  }
   0x7   :  { %v2929_v0 = vld [vmem:[%s3119_s6 + $0x40] sm:$0xff]   ;;  %v2931_v2 = vld [vmem:[%s3119_s6 + $0x48] sm:$0xff]   ;;  %v2933_v4 = vld [vmem:[%s3119_s6 + $0x50] sm:$0xff]   ;;  %s2452_s29 = sld [smem:[%s3569_s0 + %s3074_s26]]   ;;  %s3077_s8 = smov 96  }
   0x8   :  { %v2930_v1 = vld [vmem:[%s3119_s6] sm:$0xff]   ;;  %2570 = vmatprep.subr.bf16.mxu0 %v2929_v0  ;;  %v2932_v3 = vld [vmem:[%s3119_s6 + $0x8] sm:$0xff]   ;;  %v2934_v5 = vld [vmem:[%s3119_s6 + $0x10] sm:$0xff]   ;;  %s2453_s3 = sld [smem:[%s3569_s0 + %s3075_s30]]   ;;  %s3079_s10 = smov 1  }
   0x9   :  { %2571 = vmatpush3.bf16.msra.mxu0 %v2930_v1  ;;  %v2935_v6 = vld [vmem:[%s3119_s6 + $0x58] sm:$0xff]   ;;  %v2937_v8 = vld [vmem:[%s3119_s6 + $0x60] sm:$0xff]   ;;  %v2939_v10 = vld [vmem:[%s3119_s6 + $0x68] sm:$0xff]   ;;  %s2455_s7 = sld [smem:[%s3569_s0 + %s3076_s4]]   ;;  %s3080_s14 = smov 120  }
   0xa   :  { %2572 = vmatprep.subr.bf16.mxu0 %v2931_v2  ;;  %v2936_v7 = vld [vmem:[%s3119_s6 + $0x18] sm:$0xff]   ;;  %v2938_v9 = vld [vmem:[%s3119_s6 + $0x20] sm:$0xff]   ;;  %v144_v11 = vld [vmem:[%s1_s9 + $0x8] sm:$0xff]  ;;  %s3081_s15 = smov 112   ;;  %s3082_s16 = smov 56  }
   0xb   :  { %v178_v12 = vpack.c.bf16 %v144_v11, %v144_v11  ;;  %v2940_v13 = vld [vmem:[%s3119_s6 + $0x28] sm:$0xff]   ;;  %v2941_v14 = vld [vmem:[%s3119_s6 + $0x70] sm:$0xff]   ;;  %v2943_v16 = vld [vmem:[%s3119_s6 + $0x78] sm:$0xff]   ;;  %s3084_s18 = smov 48   ;;  %s3085_s19 = smov 40  }
   0xc   :  { %v2942_v15 = vld [vmem:[%s3119_s6 + $0x30] sm:$0xff]   ;;  %v2944_v17 = vld [vmem:[%s3119_s6 + $0x38] sm:$0xff]   ;;  %v143_v18 = vld [vmem:[%s1_s9] sm:$0xff]  ;;  %s3078_s9 = smov 64   ;;  %s3086_s20 = smov 16  }
   0xd   :  { %2573 = vmatpush3.bf16.msra.mxu0 %v2932_v3  ;;  %314 = vmatprep.mubr.bf16.mxu0 %v178_v12  ;;  %v177_v19 = vpack.c.bf16 %v143_v18, %v143_v18  ;;  %v326_v20 = vld [vmem:[%s2451_s13] sm:$0x1]  ;;  %v328_v24 = vld [vmem:[%s2451_s13 + $0x1] sm:$0xf]  ;;  %v2946_v50 = vld [vmem:[%s2454_s25 + $0x8] sm:$0xff]   ;;  %s3213_s13 = sld [smem:[%s3569_s0 + %s3079_s10]]   ;;  %s3089_s30 = smov 11  }
   0xe   :  { %2574 = vmatprep.subr.bf16.mxu0 %v2933_v4  ;;  %v325_v22 = vld [vmem:[%s2450_s17] sm:$0x1]  ;;  %v336_v29 = vrot.slane %v328_v24, 4  ;;  %s3083_s17 = smov 104   ;;  %s3300_s24 = sld [smem:[%s3569_s0 + %s3086_s20]]  }
   0xf   :  { %v327_v23 = vadd.f32 %v326_v20, %v325_v22  ;;  %v2481_v26 = vld [vmem:[%s2449_s21] ss:$0 sm:$0xff]  ;;  %s3090_s4 = smov 14   ;;  %s3091_s10 = smov 12  }
  0x10   :  { %v2945_v49 = vld [vmem:[%s2454_s25] sm:$0xff]   ;;  %s3087_s25 = smov 10   ;;  %s2458_s21 = sld [smem:[%s3569_s0 + %s3091_s10]]  }
  0x11   :  { %2575 = vmatpush3.bf16.msra.mxu0 %v2934_v5  ;;  %330 = vst.msk [vmem:[#allocation2] sm:$0x1] %vm329_vm1, %v327_v23  ;;  %334 = vst.msk [vmem:[#allocation2 + $0x5] sm:$0x1] %vm329_vm1, %v327_v23  ;;  %2664 = vmatpush3.bf16.msra.mxu1 %v2945_v49  ;;  %v2498_v59 = vld [vmem:[%s2452_s29] ss:$0 sm:$0xff]  ;;  %s2456_s28 = sld [smem:[%s3569_s0 + %s3087_s25]]  }
  0x12   :  { %2576 = vmatprep.subr.bf16.mxu0 %v2935_v6  ;;  %2665 = vmatprep.subr.bf16.mxu1 %v3070_v21  ;;  %v2499_v63 = vld [vmem:[%s2453_s3] ss:$0 sm:$0xff]  ;;  %s3088_s29 = smov 24   ;;  %s2457_s3 = sld [smem:[%s3569_s0 + %s3089_s30]]  }
  0x13   :  { %v2500_v4 = vld [vmem:[%s2455_s7] ss:$0 sm:$0xff]  ;;  %s2460_s7 = sld [smem:[%s3569_s0 + %s3090_s4]]   ;;  %s3092_s23 = smov 13  }
  0x14   :  { %v3216_v23 = vld [vmem:[%s3213_s13] sm:$0xff]  ;;  %s2459_s27 = sld [smem:[%s3569_s0 + %s3092_s23]]   ;;  %s3095_s6 = smov 20  }
  0x15   :  { %2577 = vmatpush3.bf16.msra.mxu0 %v2936_v7  ;;  %2666 = vmatpush3.bf16.msra.mxu1 %v2946_v50  ;;  %s2466_s11 = sld [smem:[%s3569_s0 + %s3095_s6]]   ;;  %s3096_s12 = smov 18  }
  0x16   :  { %2578 = vmatprep.subr.bf16.mxu0 %v2937_v8  ;;  %2671 = vmatprep.subr.bf16.mxu1 %v3070_v21  ;;  %s2464_s25 = sld [smem:[%s3569_s0 + %s3096_s12]]   ;;  %s3097_s26 = smov 19  }
  0x17   :  { %s2465_s30 = sld [smem:[%s3569_s0 + %s3097_s26]]   ;;  %s3098_s1 = smov 21  }
  0x18   :  { %s3102_s10 = smov 25   ;;  %s3109_s6 = smov 33  }
  0x19   :  { %2579 = vmatpush3.bf16.msra.mxu0 %v2938_v9  ;;  %s3110_s12 = smov 34  }
  0x1a   :  { %2580 = vmatprep.subr.bf16.mxu0 %v2939_v10  ;;  %s2480_s23 = sld [smem:[%s3569_s0 + %s3110_s12]]  }
  0x1d   :  { %2581 = vmatpush3.bf16.msra.mxu0 %v2940_v13 }
  0x1e   :  { %2582 = vmatprep.subr.bf16.mxu0 %v2941_v14 }
  0x21   :  { %2583 = vmatpush3.bf16.msra.mxu0 %v2942_v15 }
  0x22   :  { %2584 = vmatprep.subr.bf16.mxu0 %v2943_v16 }
  0x25   :  { %2585 = vmatpush3.bf16.msra.mxu0 %v2944_v17 }
  0x26   :  { %2701 = vmatprep.subr.bf16.mxu0 %v3070_v21 }
  0x28   :  { %315 = vmatmul.mubr.bf16.vlgmr.msra.gmra.mrb[0].mxu0 %v177_v19 }
  0x29   :  { %2703 = vmatprep.mubr.msk.bf16.mxu0 %vm3073_vm4, %v3070_v21 }
  0xfb   :  { %v2586_v25 = vpop.f32.mrb[0].mxu0 }
  0xfc   :  { %v2587_v27 = vpop.f32.mrb[1].mxu0 }
  0xfd   :  { %v2588_v28 = vadd.f32 %v2587_v27, %v2586_v25  ;;  %v2589_v30 = vpop.f32.mrb[2].mxu0  ;;  %v3219_v27 = vld [vmem:[%s3213_s13 + $0x8] sm:$0xff] }
  0xfe   :  { %v2590_v31 = vpop.f32.mrb[3].mxu0 }
  0xff   :  { %v317_v32 = vadd.f32 %v2588_v28, %v2481_v26 }
 0x101   :  { %v331_v33 = vadd.f32 %v328_v24, %v317_v32  ;;  %v338_v34 = vadd.f32 %v336_v29, %v317_v32 }
 0x103   :  { %333 = vst.msk [vmem:[#allocation2 + $0x1] sm:$0xf] %vm332_vm2, %v331_v33 }
 0x104   :  { %340 = vst.msk [vmem:[#allocation2 + $0x2] sm:$0xf0] %vm339_vm3, %v338_v34 }
 0x10b   :  { %v3159_v35 = vld [vmem:[#allocation2] sm:$0xff]  ;;  %v3163_v37 = vld [vmem:[#allocation2 + $0x8] sm:$0xff] }
 0x10c   :  { %v347_v36 = vsel %vm322_vm0, %v3159_v35, 0.0  ;;  %v350_v38 = vsel %vm322_vm0, %v3163_v37, 0.0 }
 0x10d   :  { %348 = vadd.xlane.f32.xlu0 %v347_v36 }
 0x111   :  { %351 = vadd.xlane.f32.xlu0 %v350_v38 }
 0x19a   :  { %v349_v39 = vpop.xlane.xlu0 %348 }
 0x19b   :  { %v354_v40 = vmul.f32 0.03125, %v349_v39 }
 0x19d   :  { %v356_v41 = vsub.f32 %v3159_v35, %v354_v40 }
 0x19e   :  { %v352_v42 = vpop.xlane.xlu0 %351 }
 0x19f   :  { %v355_v43 = vmul.f32 0.03125, %v352_v42  ;;  %v358_v44 = vmul.f32 %v356_v41, %v356_v41 }
 0x1a1   :  { %v357_v45 = vsub.f32 %v3163_v37, %v355_v43  ;;  %v360_v46 = vsel %vm322_vm0, %v358_v44, 0.0 }
 0x1a2   :  { %361 = vadd.xlane.f32.xlu1 %v360_v46 }
 0x1a3   :  { %v359_v47 = vmul.f32 %v357_v45, %v357_v45 }
 0x1a5   :  { %v363_v48 = vsel %vm322_vm0, %v359_v47, 0.0 }
 0x1a6   :  { %364 = vadd.xlane.f32.xlu1 %v363_v48 }
 0x22f   :  { %v362_v51 = vpop.xlane.xlu1 %361 }
 0x230   :  { %v366_v52 = vmul.f32 0.03125, %v362_v51 }
 0x232   :  { %v368_v53 = vadd.f32 1e-05, %v366_v52 }
 0x233   :  { %v365_v54 = vpop.xlane.xlu1 %364 }
 0x234   :  { %2975 = vrsqrt.f32 %v368_v53  ;;  %v367_v55 = vmul.f32 0.03125, %v365_v54 }
 0x236   :  { %v369_v56 = vadd.f32 1e-05, %v367_v55 }
 0x238   :  { %2977 = vrsqrt.f32 %v369_v56 }
 0x23e   :  { %v2976_v57 = vpop.eup %2975 }
 0x23f   :  { %v372_v58 = vmul.f32 %v2976_v57, %v356_v41 }
 0x241   :  { %v380_v62 = vmul.f32 %v2498_v59, %v372_v58 }
 0x242   :  { %v2978_v60 = vpop.eup %2977 }
 0x243   :  { %v373_v61 = vmul.f32 %v2978_v60, %v357_v45  ;;  %v388_v1 = vadd.f32 %v2499_v63, %v380_v62 }
 0x245   :  { %v381_v0 = vmul.f32 %v2498_v59, %v373_v61 }
 0x247   :  { %v389_v2 = vadd.f32 %v2499_v63, %v381_v0 }
 0x249   :  { %v394_v3 = vpack.c.bf16 %v389_v2, %v388_v1 }
 0x24b   :  { %2668 = vmatmul.mubr.msk.bf16.vlgmr.msra.gmra.mrb[0].mxu1 %vm322_vm0, %v394_v3 }
 0x24c   :  { %2673 = vmatprep.mubr.msk.bf16.mxu1 %vm3073_vm4, %v3070_v21 }
 0x31e   :  { %v451_v5 = vpop.f32.mrb[0].mxu1 }
 0x31f   :  { %v452_v6 = vadd.f32 %v2500_v4, %v451_v5  ;;  %v2669_v7 = vpop.f32.mrb[1].mxu1 }
 0x320   :  { %v454_v8 = vpop.f32.mrb[2].mxu1 }
 0x321   :  { %v455_v9 = vadd.f32 %v2500_v4, %v454_v8  ;;  %460 = vrot.lane.b32.xlu0 %v452_v6, %s3077_s8  ;;  %v2670_v10 = vpop.f32.mrb[3].mxu1 }
 0x323   :  { %v3194_v11 = vpack.c.bf16 %v455_v9, %v452_v6  ;;  %462 = vrot.lane.b32.xlu1 %v455_v9, %s3077_s8 }
 0x393   :  { %v461_v12 = vpop.permute.xlu0 %460 }
 0x394   :  { %466 = vxpose.xlu1.b32.start [1/2] (short) (narrow) %v461_v12, 32 }
 0x395   :  { %v463_v13 = vpop.permute.xlu1 %462 }
 0x398   :  { %467 = vxpose.xlu1.b32.end [2/2] (short) (narrow) %v463_v13, 32 }
 0x3be   :  { %578 = vrot.lane.b32.xlu1 %v3194_v11, %s3078_s9 }
 0x414   :  { %v482_v14 = vpop.trf.xlu1 }
 0x415   :  { %v499_v15 = vpack.c.bf16 %v482_v14, %v482_v14 }
 0x417   :  { %v506_v16 = vsel %vm504_vm5, %v499_v15, 0 }
 0x418   :  { %2672 = vmatpush3.bf16.msra.mxu1 %v506_v16  ;;  %v483_v17 = vpop.trf.xlu1 }
 0x419   :  { %2677 = vmatprep.subr.bf16.mxu1 %v3070_v21  ;;  %v625_v50 = vpack.c.bf16 %v483_v17, %v483_v17 }
 0x41b   :  { %2674 = vmatmul.mubr.msk.bf16.vlgmr.msra.gmra.mrb[4].mxu1 %vm500_vm6, %v3194_v11  ;;  %v632_v54 = vsel %vm504_vm5, %v625_v50, 0 }
 0x41c   :  { %2679 = vmatprep.mubr.msk.bf16.mxu1 %vm3073_vm4, %v3070_v21  ;;  %v3205_v18 = vpop.trf.xlu1 }
 0x420   :  { %v3207_v19 = vpop.trf.xlu1 }
 0x430   :  { %v579_v20 = vpop.permute.xlu1 %578 }
 0x431   :  { %2678 = vmatpush3.bf16.msra.mxu1 %v579_v20 }
 0x432   :  { %2683 = vmatprep.subr.bf16.mxu1 %v3070_v21 }
 0x4ee   :  { %v542_v22 = vpop.f32.mrb[4].mxu1 }
 0x4ef   :  { %v549_v24 = vmul.f32 0.35355338, %v542_v22  ;;  %v2675_v25 = vpop.f32.mrb[5].mxu1 }
 0x4f0   :  { %v545_v26 = vpop.f32.mrb[6].mxu1 }
 0x4f1   :  { %v550_v28 = vmul.f32 0.35355338, %v545_v26  ;;  %v2676_v29 = vpop.f32.mrb[7].mxu1  ;;  %v551_v30 = vadd.f32 %v549_v24, %v3216_v23  ;;  %v749_v26 = vpack.c.bf16 %v3205_v18, %v3205_v18 }
 0x4f3   :  { %v554_v31 = vsel %vm553_vm7, %v551_v30, -inf  ;;  %v552_v32 = vadd.f32 %v550_v28, %v3219_v27 }
 0x4f4   :  { %555 = vmax.xlane.f32.xlu0 %v554_v31  ;;  %v756_v31 = vsel %vm504_vm5, %v749_v26, 0 }
 0x4f5   :  { %v557_v33 = vsel %vm553_vm7, %v552_v32, -inf }
 0x4f8   :  { %558 = vmax.xlane.f32.xlu0 %v557_v33 }
 0x581   :  { %v556_v34 = vpop.xlane.xlu0 %555 }
 0x582   :  { %v560_v36 = vsub.f32 %v551_v30, %v556_v34 }
 0x584   :  { %v562_v38 = vmul.f32 1.442695, %v560_v36 }
 0x585   :  { %v559_v39 = vpop.xlane.xlu0 %558 }
 0x586   :  { %2979 = vpow2.f32 %v562_v38  ;;  %v561_v40 = vsub.f32 %v552_v32, %v559_v39  ;;  %v873_v32 = vpack.c.bf16 %v3207_v19, %v3207_v19 }
 0x588   :  { %v564_v41 = vmul.f32 1.442695, %v561_v40  ;;  %v880_v34 = vsel %vm504_vm5, %v873_v32, 0 }
 0x58a   :  { %2981 = vpow2.f32 %v564_v41 }
 0x590   :  { %v2980_v42 = vpop.eup %2979 }
 0x591   :  { %v566_v43 = vsel %vm553_vm7, %v2980_v42, 0.0 }
 0x592   :  { %567 = vadd.xlane.f32.xlu0 %v566_v43 }
 0x594   :  { %v2982_v44 = vpop.eup %2981 }
 0x595   :  { %v569_v45 = vsel %vm553_vm7, %v2982_v44, 0.0 }
 0x596   :  { %570 = vadd.xlane.f32.xlu0 %v569_v45 }
 0x5ac   :  { %626 = vrot.lane.b32.xlu0 %v3194_v11, %s3080_s14 }
 0x61f   :  { %v568_v46 = vpop.xlane.xlu0 %567 }
 0x620   :  { %2983 = vrcp.f32 %v568_v46 }
 0x623   :  { %v571_v47 = vpop.xlane.xlu0 %570 }
 0x624   :  { %2985 = vrcp.f32 %v571_v47 }
 0x627   :  { %v627_v55 = vpop.permute.xlu0 %626 }
 0x62a   :  { %v2984_v48 = vpop.eup %2983 }
 0x62b   :  { %v574_v51 = vmul.f32 %v2984_v48, %v2980_v42 }
 0x62e   :  { %v2986_v49 = vpop.eup %2985 }
 0x62f   :  { %v575_v52 = vmul.f32 %v2986_v49, %v2982_v44 }
 0x631   :  { %v576_v53 = vpack.c.bf16 %v575_v52, %v574_v51 }
 0x633   :  { %2680 = vmatmul.mubr.msk.bf16.vlgmr.msra.gmra.mrb[8].mxu1 %vm553_vm7, %v576_v53 }
 0x634   :  { %2684 = vmatpush3.bf16.msra.mxu1 %v632_v54  ;;  %2685 = vmatprep.mubr.msk.bf16.mxu1 %vm3073_vm4, %v3070_v21 }
 0x635   :  { %2689 = vmatprep.subr.bf16.mxu1 %v3070_v21 }
 0x63b   :  { %2686 = vmatmul.mubr.msk.bf16.vlgmr.msra.gmra.mrb[12].mxu1 %vm500_vm6, %v627_v55 }
 0x63c   :  { %2691 = vmatprep.mubr.msk.bf16.mxu1 %vm3073_vm4, %v3070_v21 }
 0x706   :  { %v3237_v56 = vpop.f32.mrb[8].mxu1 }
 0x707   :  { %v2681_v57 = vpop.f32.mrb[9].mxu1 }
 0x708   :  { %v3239_v58 = vpop.f32.mrb[10].mxu1 }
 0x709   :  { %v2682_v59 = vpop.f32.mrb[11].mxu1 }
 0x70e   :  { %v668_v60 = vpop.f32.mrb[12].mxu1 }
 0x70f   :  { %v675_v61 = vmul.f32 0.35355338, %v668_v60  ;;  %v2687_v62 = vpop.f32.mrb[13].mxu1 }
 0x710   :  { %v671_v63 = vpop.f32.mrb[14].mxu1 }
 0x711   :  { %v676_v0 = vmul.f32 0.35355338, %v671_v63  ;;  %v2688_v1 = vpop.f32.mrb[15].mxu1  ;;  %v677_v2 = vadd.f32 %v675_v61, %v3216_v23 }
 0x713   :  { %v679_v3 = vsel %vm553_vm7, %v677_v2, -inf  ;;  %v678_v4 = vadd.f32 %v676_v0, %v3219_v27 }
 0x714   :  { %680 = vmax.xlane.f32.xlu0 %v679_v3 }
 0x715   :  { %v682_v5 = vsel %vm553_vm7, %v678_v4, -inf }
 0x716   :  { %683 = vmax.xlane.f32.xlu1 %v682_v5 }
 0x727   :  { %750 = vrot.lane.b32.xlu1 %v3194_v11, %s3081_s15 }
 0x7a1   :  { %v681_v6 = vpop.xlane.xlu0 %680 }
 0x7a2   :  { %v685_v7 = vsub.f32 %v677_v2, %v681_v6 }
 0x7a3   :  { %v684_v8 = vpop.xlane.xlu1 %683 }
 0x7a4   :  { %v687_v9 = vmul.f32 1.442695, %v685_v7  ;;  %v686_v10 = vsub.f32 %v678_v4, %v684_v8 }
 0x7a6   :  { %2987 = vpow2.f32 %v687_v9  ;;  %v689_v12 = vmul.f32 1.442695, %v686_v10 }
 0x7a7   :  { %v751_v33 = vpop.permute.xlu1 %750 }
 0x7a8   :  { %2989 = vpow2.f32 %v689_v12 }
 0x7b0   :  { %v2988_v13 = vpop.eup %2987 }
 0x7b1   :  { %v691_v14 = vsel %vm553_vm7, %v2988_v13, 0.0 }
 0x7b2   :  { %v2990_v15 = vpop.eup %2989  ;;  %692 = vadd.xlane.f32.xlu0 %v691_v14 }
 0x7b3   :  { %v694_v16 = vsel %vm553_vm7, %v2990_v15, 0.0 }
 0x7b6   :  { %695 = vadd.xlane.f32.xlu0 %v694_v16 }
 0x7cc   :  { %702 = vrot.lane.b32.xlu0 %v3194_v11, %s3082_s16 }
 0x7d0   :  { %874 = vrot.lane.b32.xlu0 %v3194_v11, %s3083_s17 }
 0x83f   :  { %v693_v17 = vpop.xlane.xlu0 %692 }
 0x840   :  { %2991 = vrcp.f32 %v693_v17 }
 0x843   :  { %v696_v20 = vpop.xlane.xlu0 %695 }
 0x844   :  { %2993 = vrcp.f32 %v696_v20 }
 0x847   :  { %v703_v22 = vpop.permute.xlu0 %702 }
 0x848   :  { %2690 = vmatpush3.bf16.msra.mxu1 %v703_v22 }
 0x849   :  { %2695 = vmatprep.subr.bf16.mxu1 %v3070_v21 }
 0x84a   :  { %v2992_v24 = vpop.eup %2991 }
 0x84b   :  { %v699_v28 = vmul.f32 %v2992_v24, %v2988_v13  ;;  %v875_v18 = vpop.permute.xlu0 %874 }
 0x84e   :  { %v2994_v25 = vpop.eup %2993 }
 0x84f   :  { %v700_v29 = vmul.f32 %v2994_v25, %v2990_v15 }
 0x851   :  { %v701_v30 = vpack.c.bf16 %v700_v29, %v699_v28 }
 0x853   :  { %2692 = vmatmul.mubr.msk.bf16.vlgmr.msra.gmra.mrb[16].mxu1 %vm553_vm7, %v701_v30 }
 0x854   :  { %2696 = vmatpush3.bf16.msra.mxu1 %v756_v31  ;;  %2697 = vmatprep.mubr.msk.bf16.mxu1 %vm3073_vm4, %v3070_v21 }
 0x855   :  { %2707 = vmatprep.subr.bf16.mxu1 %v3070_v21 }
 0x85b   :  { %2698 = vmatmul.mubr.msk.bf16.vlgmr.msra.gmra.mrb[20].mxu1 %vm500_vm6, %v751_v33 }
 0x85c   :  { %2708 = vmatpush3.bf16.msra.mxu1 %v880_v34  ;;  %2709 = vmatprep.mubr.msk.bf16.mxu1 %vm3073_vm4, %v3070_v21 }
 0x85d   :  { %2719 = vmatprep.subr.bf16.mxu1 %v3070_v21 }
 0x863   :  { %2710 = vmatmul.mubr.msk.bf16.vlgmr.msra.gmra.mrb[24].mxu1 %vm500_vm6, %v875_v18 }
 0x864   :  { %2723 = vmatprep.mubr.msk.bf16.mxu1 %vm3073_vm4, %v3070_v21 }
 0x926   :  { %v742_v36 = vpop.f32.mrb[16].mxu1 }
 0x927   :  { %v2693_v38 = vpop.f32.mrb[17].mxu1 }
 0x928   :  { %v745_v19 = vpop.f32.mrb[18].mxu1 }
 0x929   :  { %v2899_v39 = vpack.i.bf16 %v745_v19, %v742_v36  ;;  %v2694_v40 = vpop.f32.mrb[19].mxu1 }
 0x92a   :  { %v2947_v40 = vld [vmem:[%s2456_s28] sm:$0xff]  }
 0x92b   :  { %2720 = vmatpush3.bf16.msra.mxu1 %v2947_v40 }
 0x92c   :  { %2721 = vmatprep.subr.bf16.mxu1 %v3070_v21 }
 0x92e   :  { %v792_v41 = vpop.f32.mrb[20].mxu1 }
 0x92f   :  { %v799_v42 = vmul.f32 0.35355338, %v792_v41  ;;  %v2699_v43 = vpop.f32.mrb[21].mxu1 }
 0x930   :  { %v795_v44 = vpop.f32.mrb[22].mxu1 }
 0x931   :  { %v800_v45 = vmul.f32 0.35355338, %v795_v44  ;;  %v2700_v46 = vpop.f32.mrb[23].mxu1  ;;  %v801_v47 = vadd.f32 %v799_v42, %v3216_v23 }
 0x932   :  { %v2948_v46 = vld [vmem:[%s2456_s28 + $0x8] sm:$0xff]   ;;  %s3093_s28 = smov 15  }
 0x933   :  { %v803_v48 = vsel %vm553_vm7, %v801_v47, -inf  ;;  %v802_v49 = vadd.f32 %v800_v45, %v3219_v27  ;;  %2722 = vmatpush3.bf16.msra.mxu1 %v2948_v46  ;;  %s2461_s2 = sld [smem:[%s3569_s0 + %s3093_s28]]  }
 0x934   :  { %804 = vmax.xlane.f32.xlu0 %v803_v48  ;;  %2735 = vmatprep.subr.bf16.mxu1 %v3070_v21 }
 0x935   :  { %v806_v50 = vsel %vm553_vm7, %v802_v49, -inf }
 0x936   :  { %807 = vmax.xlane.f32.xlu1 %v806_v50  ;;  %v916_v51 = vpop.f32.mrb[24].mxu1 }
 0x937   :  { %v923_v52 = vmul.f32 0.35355338, %v916_v51  ;;  %v2711_v53 = vpop.f32.mrb[25].mxu1 }
 0x938   :  { %v919_v54 = vpop.f32.mrb[26].mxu1 }
 0x939   :  { %v924_v55 = vmul.f32 0.35355338, %v919_v54  ;;  %v2712_v57 = vpop.f32.mrb[27].mxu1  ;;  %v925_v59 = vadd.f32 %v923_v52, %v3216_v23 }
 0x93b   :  { %v927_v60 = vsel %vm553_vm7, %v925_v59, -inf  ;;  %v926_v61 = vadd.f32 %v924_v55, %v3219_v27 }
 0x93c   :  { %928 = vmax.xlane.f32.xlu0 %v927_v60 }
 0x93d   :  { %v930_v62 = vsel %vm553_vm7, %v926_v61, -inf }
 0x940   :  { %931 = vmax.xlane.f32.xlu0 %v930_v62 }
 0x9c1   :  { %v805_v63 = vpop.xlane.xlu0 %804 }
 0x9c2   :  { %v809_v0 = vsub.f32 %v801_v47, %v805_v63 }
 0x9c3   :  { %v808_v1 = vpop.xlane.xlu1 %807 }
 0x9c4   :  { %v811_v2 = vmul.f32 1.442695, %v809_v0  ;;  %v810_v3 = vsub.f32 %v802_v49, %v808_v1 }
 0x9c6   :  { %2995 = vpow2.f32 %v811_v2  ;;  %v813_v4 = vmul.f32 1.442695, %v810_v3 }
 0x9c8   :  { %2997 = vpow2.f32 %v813_v4 }
 0x9c9   :  { %v929_v5 = vpop.xlane.xlu0 %928 }
 0x9ca   :  { %v933_v6 = vsub.f32 %v925_v59, %v929_v5 }
 0x9cc   :  { %v935_v7 = vmul.f32 1.442695, %v933_v6 }
 0x9cd   :  { %v932_v8 = vpop.xlane.xlu0 %931 }
 0x9ce   :  { %2999 = vpow2.f32 %v935_v7  ;;  %v934_v9 = vsub.f32 %v926_v61, %v932_v8 }
 0x9d0   :  { %v2996_v10 = vpop.eup %2995  ;;  %v937_v12 = vmul.f32 1.442695, %v934_v9 }
 0x9d1   :  { %v815_v13 = vsel %vm553_vm7, %v2996_v10, 0.0 }
 0x9d2   :  { %v2998_v14 = vpop.eup %2997  ;;  %3001 = vpow2.f32 %v937_v12  ;;  %816 = vadd.xlane.f32.xlu1 %v815_v13 }
 0x9d3   :  { %v818_v15 = vsel %vm553_vm7, %v2998_v14, 0.0 }
 0x9d4   :  { %819 = vadd.xlane.f32.xlu0 %v818_v15 }
 0x9d8   :  { %v3000_v16 = vpop.eup %2999 }
 0x9d9   :  { %v939_v17 = vsel %vm553_vm7, %v3000_v16, 0.0 }
 0x9da   :  { %940 = vadd.xlane.f32.xlu1 %v939_v17 }
 0x9dc   :  { %v3002_v20 = vpop.eup %3001 }
 0x9dd   :  { %v942_v22 = vsel %vm553_vm7, %v3002_v20, 0.0 }
 0x9de   :  { %943 = vadd.xlane.f32.xlu0 %v942_v22 }
 0x9eb   :  { %826 = vrot.lane.b32.xlu1 %v3194_v11, %s3084_s18 }
 0x9ef   :  { %2900 = vrot.lane.b32.xlu1 %v2899_v39, %s3072_s22 }
 0x9f4   :  { %950 = vrot.lane.b32.xlu0 %v3194_v11, %s3085_s19 }
 0xa5f   :  { %v817_v24 = vpop.xlane.xlu1 %816 }
 0xa60   :  { %3003 = vrcp.f32 %v817_v24 }
 0xa61   :  { %v820_v25 = vpop.xlane.xlu0 %819 }
 0xa62   :  { %3005 = vrcp.f32 %v820_v25 }
 0xa67   :  { %v941_v26 = vpop.xlane.xlu1 %940 }
 0xa68   :  { %3007 = vrcp.f32 %v941_v26 }
 0xa6a   :  { %v3004_v28 = vpop.eup %3003 }
 0xa6b   :  { %v827_v29 = vpop.permute.xlu1 %826  ;;  %v944_v30 = vpop.xlane.xlu0 %943  ;;  %v823_v32 = vmul.f32 %v3004_v28, %v2996_v10 }
 0xa6c   :  { %v3006_v31 = vpop.eup %3005  ;;  %3009 = vrcp.f32 %v944_v30  ;;  %2702 = vmatpush3.bf16.msra.mxu0 %v827_v29  ;;  %v2949_v29 = vld [vmem:[%s2460_s7] sm:$0xff]   ;;  %v2950_v30 = vld [vmem:[%s2460_s7 + $0x8] sm:$0xff]   ;;  %s2470_s7 = sld [smem:[%s3569_s0 + %s3088_s29]]  }
 0xa6d   :  { %v824_v33 = vmul.f32 %v3006_v31, %v2998_v14  ;;  %2713 = vmatprep.subr.bf16.mxu0 %v3070_v21 }
 0xa6f   :  { %v951_v34 = vpop.permute.xlu0 %950  ;;  %v825_v18 = vpack.c.bf16 %v824_v33, %v823_v32  ;;  %v2901_v52 = vpop.permute.xlu1 %2900 }
 0xa70   :  { %v2903_v54 = vunpack.i.h.bf16 %v2901_v52  ;;  %v2902_v55 = vunpack.i.l.bf16 %v2901_v52  ;;  %v2956_v52 = vld [vmem:[%s3300_s24 + $0x28] sm:$0xff]  }
 0xa71   :  { %2704 = vmatmul.mubr.msk.bf16.vlgmr.msra.gmra.mrb[4].mxu0 %vm553_vm7, %v825_v18 }
 0xa72   :  { %2714 = vmatpush3.bf16.msra.mxu0 %v951_v34  ;;  %2715 = vmatprep.mubr.msk.bf16.mxu0 %vm3073_vm4, %v3070_v21  ;;  %v3008_v11 = vpop.eup %3007  ;;  %v1022_v61 = vsel %vm500_vm6, %v3239_v58, %v2903_v54  ;;  %v1021_v62 = vsel %vm500_vm6, %v3237_v56, %v2902_v55  ;;  %v2515_v58 = vld [vmem:[%s2457_s3] ss:$0 sm:$0xff]  ;;  %v2958_v54 = vld [vmem:[%s3300_s24 + $0x38] sm:$0xff]   ;;  %s2467_s3 = sld [smem:[%s3569_s0 + %s3098_s1]]  }
 0xa73   :  { %2727 = vmatprep.subr.bf16.mxu0 %v3070_v21  ;;  %v947_v38 = vmul.f32 %v3008_v11, %v3000_v16  ;;  %v2518_v55 = vld [vmem:[%s2461_s2] ss:$0 sm:$0xff]  ;;  %s3105_s2 = smov 29  }
 0xa76   :  { %v3010_v36 = vpop.eup %3009 }
 0xa77   :  { %v948_v19 = vmul.f32 %v3010_v36, %v3002_v20 }
 0xa79   :  { %v949_v39 = vpack.c.bf16 %v948_v19, %v947_v38  ;;  %v2516_v38 = vld [vmem:[%s2458_s21] ss:$0 sm:$0xff]  ;;  %s2471_s21 = sld [smem:[%s3569_s0 + %s3102_s10]]  }
 0xa7b   :  { %2716 = vmatmul.mubr.msk.bf16.vlgmr.msra.gmra.mrb[8].mxu0 %vm553_vm7, %v949_v39 }
 0xa7c   :  { %2731 = vmatprep.mubr.msk.bf16.mxu0 %vm3073_vm4, %v3070_v21  ;;  %2728 = vmatpush3.bf16.msra.mxu0 %v2949_v29 }
 0xa7d   :  { %2729 = vmatprep.subr.bf16.mxu0 %v3070_v21 }
 0xa80   :  { %2730 = vmatpush3.bf16.msra.mxu0 %v2950_v30 }
 0xa81   :  { %2755 = vmatprep.subr.bf16.mxu0 %v3070_v21 }
 0xb44   :  { %v866_v41 = vpop.f32.mrb[4].mxu0 }
 0xb45   :  { %v2705_v42 = vpop.f32.mrb[5].mxu0 }
 0xb46   :  { %v869_v43 = vpop.f32.mrb[6].mxu0  ;;  %v2517_v42 = vld [vmem:[%s2459_s27] ss:$0 sm:$0xff]  ;;  %s3104_s27 = smov 27  }
 0xb47   :  { %v2904_v44 = vpack.i.bf16 %v869_v43, %v866_v41  ;;  %v2706_v45 = vpop.f32.mrb[7].mxu0  ;;  %s2473_s1 = sld [smem:[%s3569_s0 + %s3104_s27]]  }
 0xb49   :  { %2905 = vrot.lane.b32.xlu1 %v2904_v44, %s3086_s20 }
 0xb4e   :  { %v990_v47 = vpop.f32.mrb[8].mxu0 }
 0xb4f   :  { %v2717_v48 = vpop.f32.mrb[9].mxu0 }
 0xb50   :  { %v993_v49 = vpop.f32.mrb[10].mxu0  ;;  %v2952_v48 = vld [vmem:[%s3300_s24 + $0x8] sm:$0xff]  }
 0xb51   :  { %v2909_v50 = vpack.i.bf16 %v993_v49, %v990_v47  ;;  %v2718_v51 = vpop.f32.mrb[11].mxu0  ;;  %v2951_v47 = vld [vmem:[%s3300_s24] sm:$0xff]   ;;  %v2953_v49 = vld [vmem:[%s3300_s24 + $0x10] sm:$0xff]  }
 0xb52   :  { %v2955_v51 = vld [vmem:[%s3300_s24 + $0x20] sm:$0xff]  }
 0xb53   :  { %2910 = vrot.lane.b32.xlu0 %v2909_v50, %s3088_s29  ;;  %v2954_v50 = vld [vmem:[%s3300_s24 + $0x18] sm:$0xff]  }
 0xbbb   :  { %v2906_v53 = vpop.permute.xlu1 %2905 }
 0xbbc   :  { %v2908_v57 = vunpack.i.h.bf16 %v2906_v53  ;;  %v2907_v59 = vunpack.i.l.bf16 %v2906_v53  ;;  %v2957_v53 = vld [vmem:[%s3300_s24 + $0x30] sm:$0xff]   ;;  %s3094_s24 = smov 17  }
 0xbbd   :  { %s2463_s5 = sld [smem:[%s3569_s0 + %s3094_s24]]  }
 0xbbe   :  { %v1024_v1 = vsel %vm553_vm7, %v1022_v61, %v2908_v57  ;;  %v1023_v2 = vsel %vm553_vm7, %v1021_v62, %v2907_v59 }
 0xbc5   :  { %v2911_v60 = vpop.permute.xlu0 %2910 }
 0xbc6   :  { %v2913_v63 = vunpack.i.h.bf16 %v2911_v60  ;;  %v2912_v0 = vunpack.i.l.bf16 %v2911_v60 }
 0xbc8   :  { %v1027_v3 = vsel %vm1025_vm8, %v1024_v1, %v2913_v63  ;;  %v1026_v4 = vsel %vm1025_vm8, %v1023_v2, %v2912_v0 }
 0xbc9   :  { %v1032_v5 = vpack.c.bf16 %v1027_v3, %v1026_v4 }
 0xbcb   :  { %2724 = vmatmul.mubr.msk.bf16.vlgmr.msra.gmra.mrb[28].mxu1 %vm322_vm0, %v1032_v5 }
 0xbcc   :  { %2751 = vmatprep.mubr.msk.bf16.mxu1 %vm3073_vm4, %v3070_v21  ;;  %2736 = vmatpush3.bf16.msra.mxu1 %v2951_v47 }
 0xbcd   :  { %2737 = vmatprep.subr.bf16.mxu1 %v3070_v21 }
 0xbd0   :  { %2738 = vmatpush3.bf16.msra.mxu1 %v2952_v48 }
 0xbd1   :  { %2739 = vmatprep.subr.bf16.mxu1 %v3070_v21 }
 0xbd4   :  { %2740 = vmatpush3.bf16.msra.mxu1 %v2953_v49 }
 0xbd5   :  { %2741 = vmatprep.subr.bf16.mxu1 %v3070_v21 }
 0xbd8   :  { %2742 = vmatpush3.bf16.msra.mxu1 %v2954_v50  ;;  %v2531_v50 = vld [vmem:[%s2464_s25] ss:$0 sm:$0xff] }
 0xbd9   :  { %2743 = vmatprep.subr.bf16.mxu1 %v3070_v21 }
 0xbdc   :  { %2744 = vmatpush3.bf16.msra.mxu1 %v2955_v51 }
 0xbdd   :  { %2745 = vmatprep.subr.bf16.mxu1 %v3070_v21 }
 0xbe0   :  { %2746 = vmatpush3.bf16.msra.mxu1 %v2956_v52 }
 0xbe1   :  { %2747 = vmatprep.subr.bf16.mxu1 %v3070_v21 }
 0xbe4   :  { %2748 = vmatpush3.bf16.msra.mxu1 %v2957_v53 }
 0xbe5   :  { %2749 = vmatprep.subr.bf16.mxu1 %v3070_v21 }
 0xbe8   :  { %2750 = vmatpush3.bf16.msra.mxu1 %v2958_v54 }
 0xbe9   :  { %2781 = vmatprep.subr.bf16.mxu1 %v3070_v21 }
 0xc9e   :  { %v1082_v56 = vpop.f32.mrb[28].mxu1 }
 0xc9f   :  { %v1089_v6 = vadd.f32 %v1082_v56, %v3159_v35  ;;  %v2725_v7 = vpop.f32.mrb[29].mxu1 }
 0xca0   :  { %v1085_v8 = vpop.f32.mrb[30].mxu1 }
 0xca1   :  { %v3324_v9 = vadd.f32 %v2515_v58, %v1089_v6  ;;  %v1090_v10 = vadd.f32 %v1085_v8, %v3163_v37  ;;  %v2726_v12 = vpop.f32.mrb[31].mxu1 }
 0xca3   :  { %v3327_v13 = vadd.f32 %v2515_v58, %v1090_v10  ;;  %v1102_v14 = vsel %vm322_vm0, %v3324_v9, 0.0 }
 0xca4   :  { %1103 = vadd.xlane.f32.xlu1 %v1102_v14 }
 0xca5   :  { %v1105_v15 = vsel %vm322_vm0, %v3327_v13, 0.0 }
 0xca6   :  { %1106 = vadd.xlane.f32.xlu0 %v1105_v15 }
 0xd31   :  { %v1104_v16 = vpop.xlane.xlu1 %1103 }
 0xd32   :  { %v1108_v17 = vmul.f32 0.03125, %v1104_v16 }
 0xd33   :  { %v1107_v35 = vpop.xlane.xlu0 %1106 }
 0xd34   :  { %v1110_v20 = vsub.f32 %v3324_v9, %v1108_v17  ;;  %v1109_v22 = vmul.f32 0.03125, %v1107_v35 }
 0xd36   :  { %v1111_v24 = vsub.f32 %v3327_v13, %v1109_v22  ;;  %v1112_v37 = vmul.f32 %v1110_v20, %v1110_v20 }
 0xd38   :  { %v1114_v25 = vsel %vm322_vm0, %v1112_v37, 0.0  ;;  %v1113_v26 = vmul.f32 %v1111_v24, %v1111_v24 }
 0xd39   :  { %1115 = vadd.xlane.f32.xlu0 %v1114_v25 }
 0xd3a   :  { %v1117_v28 = vsel %vm322_vm0, %v1113_v26, 0.0 }
 0xd3b   :  { %1118 = vadd.xlane.f32.xlu1 %v1117_v28 }
 0xdc6   :  { %v1116_v31 = vpop.xlane.xlu0 %1115 }
 0xdc7   :  { %v1120_v32 = vmul.f32 0.03125, %v1116_v31 }
 0xdc8   :  { %v1119_v33 = vpop.xlane.xlu1 %1118 }
 0xdc9   :  { %v1122_v34 = vadd.f32 1e-05, %v1120_v32  ;;  %v1121_v18 = vmul.f32 0.03125, %v1119_v33 }
 0xdcb   :  { %3011 = vrsqrt.f32 %v1122_v34  ;;  %v1123_v11 = vadd.f32 1e-05, %v1121_v18 }
 0xdcd   :  { %3013 = vrsqrt.f32 %v1123_v11 }
 0xdd5   :  { %v3012_v36 = vpop.eup %3011 }
 0xdd6   :  { %v1126_v19 = vmul.f32 %v3012_v36, %v1110_v20 }
 0xdd7   :  { %v3014_v39 = vpop.eup %3013 }
 0xdd8   :  { %v1134_v40 = vmul.f32 %v2516_v38, %v1126_v19  ;;  %v1127_v41 = vmul.f32 %v3014_v39, %v1111_v24  ;;  %v2530_v24 = vld [vmem:[%s2463_s5] ss:$0 sm:$0xff] }
 0xdda   :  { %v1135_v43 = vmul.f32 %v2516_v38, %v1127_v41  ;;  %v1142_v44 = vadd.f32 %v2517_v42, %v1134_v40  ;;  %v2959_v41 = vld [vmem:[%s2466_s11] sm:$0xff]  }
 0xddc   :  { %v1143_v45 = vadd.f32 %v2517_v42, %v1135_v43  ;;  %v2960_v42 = vld [vmem:[%s2466_s11 + $0x8] sm:$0xff]   ;;  %s2479_s11 = sld [smem:[%s3569_s0 + %s3109_s6]]  }
 0xdde   :  { %v1148_v46 = vpack.c.bf16 %v1143_v45, %v1142_v44 }
 0xde0   :  { %2732 = vmatmul.mubr.msk.bf16.vlgmr.msra.gmra.mrb[12].mxu0 %vm322_vm0, %v1148_v46 }
 0xde1   :  { %2759 = vmatprep.mubr.msk.bf16.mxu0 %vm3073_vm4, %v3070_v21  ;;  %2756 = vmatpush3.bf16.msra.mxu0 %v2959_v41 }
 0xde2   :  { %2757 = vmatprep.subr.bf16.mxu0 %v3070_v21 }
 0xde5   :  { %2758 = vmatpush3.bf16.msra.mxu0 %v2960_v42 }
 0xde6   :  { %2763 = vmatprep.subr.bf16.mxu0 %v3070_v21 }
 0xeb3   :  { %v1205_v57 = vpop.f32.mrb[12].mxu0 }
 0xeb4   :  { %v1206_v59 = vadd.f32 %v2518_v55, %v1205_v57  ;;  %v2733_v60 = vpop.f32.mrb[13].mxu0 }
 0xeb5   :  { %v1208_v61 = vpop.f32.mrb[14].mxu0 }
 0xeb6   :  { %v1214_v62 = vmul.f32 0.044715, %v1206_v59  ;;  %v1209_v63 = vadd.f32 %v2518_v55, %v1208_v61  ;;  %v2734_v0 = vpop.f32.mrb[15].mxu0  ;;  %v1212_v14 = vmul.f32 0.5, %v1206_v59  ;;  %v2532_v55 = vld [vmem:[%s2465_s30] ss:$0 sm:$0xff] }
 0xeb8   :  { %v1216_v1 = vmul.f32 %v1214_v62, %v1206_v59  ;;  %v1215_v2 = vmul.f32 0.044715, %v1209_v63  ;;  %v1213_v15 = vmul.f32 0.5, %v1209_v63  ;;  %v2533_v62 = vld [vmem:[%s2467_s3] ss:$0 sm:$0xff] }
 0xeba   :  { %v1218_v3 = vmul.f32 %v1216_v1, %v1206_v59  ;;  %v1217_v4 = vmul.f32 %v1215_v2, %v1209_v63 }
 0xebc   :  { %v1220_v5 = vadd.f32 %v1218_v3, %v1206_v59  ;;  %v1219_v56 = vmul.f32 %v1217_v4, %v1209_v63 }
 0xebe   :  { %v1222_v58 = vmul.f32 0.7978846, %v1220_v5  ;;  %v1221_v6 = vadd.f32 %v1219_v56, %v1209_v63 }
 0xec0   :  { %3015 = vtanh.f32 %v1222_v58  ;;  %v1223_v7 = vmul.f32 0.7978846, %v1221_v6 }
 0xec2   :  { %3017 = vtanh.f32 %v1223_v7 }
 0xeca   :  { %v3016_v8 = vpop.eup %3015 }
 0xecb   :  { %v1226_v10 = vadd.f32 1.0, %v3016_v8 }
 0xecc   :  { %v3018_v12 = vpop.eup %3017 }
 0xecd   :  { %v1227_v16 = vadd.f32 1.0, %v3018_v12  ;;  %v1228_v17 = vmul.f32 %v1226_v10, %v1212_v14 }
 0xecf   :  { %v1229_v35 = vmul.f32 %v1227_v16, %v1213_v15 }
 0xed1   :  { %v1246_v20 = vpack.c.bf16 %v1229_v35, %v1228_v17 }
 0xed3   :  { %2752 = vmatmul.mubr.bf16.vlgmr.msra.gmra.mrb[32].mxu1 %v1246_v20 }
 0xed4   :  { %2783 = vmatprep.mubr.msk.bf16.mxu1 %vm3073_vm4, %v3070_v21 }
 0xfa6   :  { %v1329_v22 = vpop.f32.mrb[32].mxu1 }
 0xfa7   :  { %v1336_v37 = vadd.f32 %v1329_v22, %v3324_v9  ;;  %v2753_v25 = vpop.f32.mrb[33].mxu1 }
 0xfa8   :  { %v1332_v26 = vpop.f32.mrb[34].mxu1 }
 0xfa9   :  { %v3376_v28 = vadd.f32 %v2530_v24, %v1336_v37  ;;  %v1337_v29 = vadd.f32 %v1332_v26, %v3327_v13  ;;  %v2754_v30 = vpop.f32.mrb[35].mxu1 }
 0xfab   :  { %v3379_v31 = vadd.f32 %v2530_v24, %v1337_v29  ;;  %v1349_v32 = vsel %vm322_vm0, %v3376_v28, 0.0 }
 0xfac   :  { %1350 = vadd.xlane.f32.xlu0 %v1349_v32 }
 0xfad   :  { %v1352_v33 = vsel %vm322_vm0, %v3379_v31, 0.0 }
 0xfae   :  { %1353 = vadd.xlane.f32.xlu1 %v1352_v33 }
0x1039   :  { %v1351_v34 = vpop.xlane.xlu0 %1350 }
0x103a   :  { %v1355_v18 = vmul.f32 0.03125, %v1351_v34 }
0x103b   :  { %v1354_v9 = vpop.xlane.xlu1 %1353 }
0x103c   :  { %v1357_v11 = vsub.f32 %v3376_v28, %v1355_v18  ;;  %v1356_v36 = vmul.f32 0.03125, %v1354_v9 }
0x103e   :  { %v1358_v38 = vsub.f32 %v3379_v31, %v1356_v36  ;;  %v1359_v13 = vmul.f32 %v1357_v11, %v1357_v11 }
0x1040   :  { %v1361_v19 = vsel %vm322_vm0, %v1359_v13, 0.0  ;;  %v1360_v39 = vmul.f32 %v1358_v38, %v1358_v38 }
0x1041   :  { %1362 = vadd.xlane.f32.xlu0 %v1361_v19 }
0x1042   :  { %v1364_v40 = vsel %vm322_vm0, %v1360_v39, 0.0 }
0x1043   :  { %1365 = vadd.xlane.f32.xlu1 %v1364_v40 }
0x10ce   :  { %v1363_v43 = vpop.xlane.xlu0 %1362 }
0x10cf   :  { %v1367_v44 = vmul.f32 0.03125, %v1363_v43 }
0x10d0   :  { %v1366_v45 = vpop.xlane.xlu1 %1365 }
0x10d1   :  { %v1369_v46 = vadd.f32 1e-05, %v1367_v44  ;;  %v1368_v47 = vmul.f32 0.03125, %v1366_v45 }
0x10d3   :  { %3019 = vrsqrt.f32 %v1369_v46  ;;  %v1370_v48 = vadd.f32 1e-05, %v1368_v47 }
0x10d5   :  { %3021 = vrsqrt.f32 %v1370_v48 }
0x10dd   :  { %v3020_v49 = vpop.eup %3019 }
0x10de   :  { %v1373_v51 = vmul.f32 %v3020_v49, %v1357_v11 }
0x10df   :  { %v3022_v52 = vpop.eup %3021 }
0x10e0   :  { %v1381_v53 = vmul.f32 %v2531_v50, %v1373_v51  ;;  %v1374_v54 = vmul.f32 %v3022_v52, %v1358_v38 }
0x10e2   :  { %v1382_v57 = vmul.f32 %v2531_v50, %v1374_v54  ;;  %v1389_v59 = vadd.f32 %v2532_v55, %v1381_v53 }
0x10e4   :  { %v1390_v60 = vadd.f32 %v2532_v55, %v1382_v57 }
0x10e6   :  { %v1395_v61 = vpack.c.bf16 %v1390_v60, %v1389_v59 }
0x10e8   :  { %2760 = vmatmul.mubr.msk.bf16.vlgmr.msra.gmra.mrb[16].mxu0 %vm322_vm0, %v1395_v61 }
0x10e9   :  { %2765 = vmatprep.mubr.msk.bf16.mxu0 %vm3073_vm4, %v3070_v21 }
0x11bb   :  { %v1452_v63 = vpop.f32.mrb[16].mxu0 }
0x11bc   :  { %v1453_v0 = vadd.f32 %v2533_v62, %v1452_v63  ;;  %v2761_v1 = vpop.f32.mrb[17].mxu0 }
0x11bd   :  { %v1455_v2 = vpop.f32.mrb[18].mxu0 }
0x11be   :  { %v1456_v3 = vadd.f32 %v2533_v62, %v1455_v2  ;;  %1461 = vrot.lane.b32.xlu0 %v1453_v0, %s3077_s8  ;;  %v2762_v4 = vpop.f32.mrb[19].mxu0 }
0x11c0   :  { %v3407_v5 = vpack.c.bf16 %v1456_v3, %v1453_v0  ;;  %1463 = vrot.lane.b32.xlu1 %v1456_v3, %s3077_s8  ;;  %v3065_v0 = vld [vmem:[%s3213_s13] sm:$0xff]  ;;  %v3066_v3 = vld [vmem:[%s3213_s13 + $0x8] sm:$0xff]  ;;  %s3099_s8 = smov 22  }
0x1230   :  { %v1462_v56 = vpop.permute.xlu0 %1461 }
0x1231   :  { %1467 = vxpose.xlu1.b32.start [1/2] (short) (narrow) %v1462_v56, 32 }
0x1232   :  { %v1464_v58 = vpop.permute.xlu1 %1463 }
0x1235   :  { %1468 = vxpose.xlu1.b32.end [2/2] (short) (narrow) %v1464_v58, 32 }
0x125b   :  { %1576 = vrot.lane.b32.xlu1 %v3407_v5, %s3078_s9  ;;  %s3106_s9 = smov 32  }
0x12b1   :  { %v1483_v6 = vpop.trf.xlu1 }
0x12b2   :  { %v1500_v7 = vpack.c.bf16 %v1483_v6, %v1483_v6 }
0x12b4   :  { %v1505_v8 = vsel %vm504_vm5, %v1500_v7, 0 }
0x12b5   :  { %2764 = vmatpush3.bf16.msra.mxu0 %v1505_v8  ;;  %v1484_v10 = vpop.trf.xlu1 }
0x12b6   :  { %2769 = vmatprep.subr.bf16.mxu0 %v3070_v21  ;;  %v1623_v40 = vpack.c.bf16 %v1484_v10, %v1484_v10 }
0x12b8   :  { %2766 = vmatmul.mubr.msk.bf16.vlgmr.msra.gmra.mrb[20].mxu0 %vm500_vm6, %v3407_v5  ;;  %v1630_v44 = vsel %vm504_vm5, %v1623_v40, 0 }
0x12b9   :  { %2771 = vmatprep.mubr.msk.bf16.mxu0 %vm3073_vm4, %v3070_v21  ;;  %v1485_v12 = vpop.trf.xlu1 }
0x12ba   :  { %v1747_v45 = vpack.c.bf16 %v1485_v12, %v1485_v12 }
0x12bc   :  { %v1754_v47 = vsel %vm504_vm5, %v1747_v45, 0 }
0x12bd   :  { %v1486_v14 = vpop.trf.xlu1 }
0x12be   :  { %v1871_v48 = vpack.c.bf16 %v1486_v14, %v1486_v14 }
0x12c0   :  { %v1878_v50 = vsel %vm504_vm5, %v1871_v48, 0 }
0x12cd   :  { %v1577_v15 = vpop.permute.xlu1 %1576 }
0x12ce   :  { %2770 = vmatpush3.bf16.msra.mxu0 %v1577_v15 }
0x12cf   :  { %2775 = vmatprep.subr.bf16.mxu0 %v3070_v21 }
0x138b   :  { %v1541_v16 = vpop.f32.mrb[20].mxu0 }
0x138c   :  { %v1548_v17 = vmul.f32 0.35355338, %v1541_v16  ;;  %v2767_v35 = vpop.f32.mrb[21].mxu0 }
0x138d   :  { %v1544_v20 = vpop.f32.mrb[22].mxu0 }
0x138e   :  { %v1549_v22 = vmul.f32 0.35355338, %v1544_v20  ;;  %v2768_v24 = vpop.f32.mrb[23].mxu0  ;;  %v1550_v37 = vadd.f32 %v1548_v17, %v3216_v23 }
0x1390   :  { %v1552_v25 = vsel %vm553_vm7, %v1550_v37, -inf  ;;  %v1551_v26 = vadd.f32 %v1549_v22, %v3219_v27 }
0x1391   :  { %1553 = vmax.xlane.f32.xlu0 %v1552_v25 }
0x1392   :  { %v1555_v29 = vsel %vm553_vm7, %v1551_v26, -inf }
0x1395   :  { %1556 = vmax.xlane.f32.xlu0 %v1555_v29 }
0x141e   :  { %v1554_v30 = vpop.xlane.xlu0 %1553 }
0x141f   :  { %v1558_v32 = vsub.f32 %v1550_v37, %v1554_v30 }
0x1421   :  { %v1560_v33 = vmul.f32 1.442695, %v1558_v32 }
0x1422   :  { %v1557_v34 = vpop.xlane.xlu0 %1556 }
0x1423   :  { %3023 = vpow2.f32 %v1560_v33  ;;  %v1559_v18 = vsub.f32 %v1551_v26, %v1557_v34 }
0x1425   :  { %v1562_v9 = vmul.f32 1.442695, %v1559_v18 }
0x1427   :  { %3025 = vpow2.f32 %v1562_v9 }
0x142d   :  { %v3024_v11 = vpop.eup %3023 }
0x142e   :  { %v1564_v36 = vsel %vm553_vm7, %v3024_v11, 0.0 }
0x142f   :  { %1565 = vadd.xlane.f32.xlu0 %v1564_v36 }
0x1431   :  { %v3026_v23 = vpop.eup %3025 }
0x1432   :  { %v1567_v38 = vsel %vm553_vm7, %v3026_v23, 0.0 }
0x1433   :  { %1568 = vadd.xlane.f32.xlu0 %v1567_v38 }
0x1449   :  { %1624 = vrot.lane.b32.xlu0 %v3407_v5, %s3080_s14  ;;  %s2468_s14 = sld [smem:[%s3569_s0 + %s3099_s8]]  }
0x144a   :  { %s2475_s8 = sld [smem:[%s3569_s0 + %s3105_s2]]  }
0x144d   :  { %1748 = vrot.lane.b32.xlu0 %v3407_v5, %s3081_s15  ;;  %s3107_s15 = smov 30  }
0x1451   :  { %1872 = vrot.lane.b32.xlu0 %v3407_v5, %s3083_s17 }
0x14bc   :  { %v1566_v27 = vpop.xlane.xlu0 %1565 }
0x14bd   :  { %3027 = vrcp.f32 %v1566_v27 }
0x14c0   :  { %v1569_v13 = vpop.xlane.xlu0 %1568 }
0x14c1   :  { %3029 = vrcp.f32 %v1569_v13 }
0x14c4   :  { %v1625_v46 = vpop.permute.xlu0 %1624 }
0x14c7   :  { %v3028_v19 = vpop.eup %3027 }
0x14c8   :  { %v1572_v41 = vmul.f32 %v3028_v19, %v3024_v11  ;;  %v1749_v49 = vpop.permute.xlu0 %1748 }
0x14cb   :  { %v3030_v39 = vpop.eup %3029 }
0x14cc   :  { %v1573_v42 = vmul.f32 %v3030_v39, %v3026_v23  ;;  %v1873_v51 = vpop.permute.xlu0 %1872 }
0x14ce   :  { %v1574_v43 = vpack.c.bf16 %v1573_v42, %v1572_v41 }
0x14d0   :  { %2772 = vmatmul.mubr.msk.bf16.vlgmr.msra.gmra.mrb[24].mxu0 %vm553_vm7, %v1574_v43 }
0x14d1   :  { %2776 = vmatpush3.bf16.msra.mxu0 %v1630_v44  ;;  %2777 = vmatprep.mubr.msk.bf16.mxu0 %vm3073_vm4, %v3070_v21 }
0x14d2   :  { %2787 = vmatprep.subr.bf16.mxu0 %v3070_v21 }
0x14d8   :  { %2778 = vmatmul.mubr.msk.bf16.vlgmr.msra.gmra.mrb[28].mxu0 %vm500_vm6, %v1625_v46 }
0x14d9   :  { %2788 = vmatpush3.bf16.msra.mxu0 %v1754_v47  ;;  %2789 = vmatprep.mubr.msk.bf16.mxu0 %vm3073_vm4, %v3070_v21 }
0x14da   :  { %2799 = vmatprep.subr.bf16.mxu0 %v3070_v21 }
0x14e0   :  { %2790 = vmatmul.mubr.msk.bf16.vlgmr.msra.gmra.mrb[32].mxu0 %vm500_vm6, %v1749_v49 }
0x14e1   :  { %2800 = vmatpush3.bf16.msra.mxu0 %v1878_v50  ;;  %2801 = vmatprep.mubr.msk.bf16.mxu0 %vm3073_vm4, %v3070_v21 }
0x14e2   :  { %2811 = vmatprep.subr.bf16.mxu0 %v3070_v21 }
0x14e8   :  { %2802 = vmatmul.mubr.msk.bf16.vlgmr.msra.gmra.mrb[36].mxu0 %vm500_vm6, %v1873_v51 }
0x14e9   :  { %2815 = vmatprep.mubr.msk.bf16.mxu0 %vm3073_vm4, %v3070_v21 }
0x15a3   :  { %v3449_v52 = vpop.f32.mrb[24].mxu0 }
0x15a4   :  { %v2773_v53 = vpop.f32.mrb[25].mxu0 }
0x15a5   :  { %v3451_v54 = vpop.f32.mrb[26].mxu0 }
0x15a6   :  { %v2774_v55 = vpop.f32.mrb[27].mxu0 }
0x15ab   :  { %v1666_v57 = vpop.f32.mrb[28].mxu0 }
0x15ac   :  { %v1673_v59 = vmul.f32 0.35355338, %v1666_v57  ;;  %v2779_v60 = vpop.f32.mrb[29].mxu0 }
0x15ad   :  { %v1669_v61 = vpop.f32.mrb[30].mxu0 }
0x15ae   :  { %v1674_v62 = vmul.f32 0.35355338, %v1669_v61  ;;  %v2780_v63 = vpop.f32.mrb[31].mxu0  ;;  %v1675_v1 = vadd.f32 %v3065_v0, %v1673_v59 }
0x15b0   :  { %v1677_v2 = vsel %vm553_vm7, %v1675_v1, -inf  ;;  %v1676_v4 = vadd.f32 %v3066_v3, %v1674_v62 }
0x15b1   :  { %1678 = vmax.xlane.f32.xlu0 %v1677_v2 }
0x15b2   :  { %v1680_v56 = vsel %vm553_vm7, %v1676_v4, -inf }
0x15b3   :  { %1681 = vmax.xlane.f32.xlu1 %v1680_v56  ;;  %v1790_v58 = vpop.f32.mrb[32].mxu0 }
0x15b4   :  { %v1797_v6 = vmul.f32 0.35355338, %v1790_v58  ;;  %v2791_v7 = vpop.f32.mrb[33].mxu0 }
0x15b5   :  { %v1793_v8 = vpop.f32.mrb[34].mxu0 }
0x15b6   :  { %v1798_v10 = vmul.f32 0.35355338, %v1793_v8  ;;  %v2792_v12 = vpop.f32.mrb[35].mxu0  ;;  %v1799_v14 = vadd.f32 %v3065_v0, %v1797_v6 }
0x15b8   :  { %v1801_v15 = vsel %vm553_vm7, %v1799_v14, -inf  ;;  %v1800_v16 = vadd.f32 %v3066_v3, %v1798_v10 }
0x15b9   :  { %1802 = vmax.xlane.f32.xlu0 %v1801_v15 }
0x15ba   :  { %v1804_v22 = vsel %vm553_vm7, %v1800_v16, -inf }
0x15bb   :  { %v1914_v17 = vpop.f32.mrb[36].mxu0 }
0x15bc   :  { %v1921_v35 = vmul.f32 0.35355338, %v1914_v17  ;;  %v2803_v20 = vpop.f32.mrb[37].mxu0 }
0x15bd   :  { %1805 = vmax.xlane.f32.xlu0 %v1804_v22  ;;  %v1917_v24 = vpop.f32.mrb[38].mxu0 }
0x15be   :  { %v1922_v37 = vmul.f32 0.35355338, %v1917_v24  ;;  %v2804_v25 = vpop.f32.mrb[39].mxu0  ;;  %v1923_v26 = vadd.f32 %v3065_v0, %v1921_v35 }
0x15c0   :  { %v1925_v29 = vsel %vm553_vm7, %v1923_v26, -inf  ;;  %v1924_v30 = vadd.f32 %v3066_v3, %v1922_v37 }
0x15c1   :  { %1926 = vmax.xlane.f32.xlu0 %v1925_v29 }
0x15c2   :  { %v1928_v32 = vsel %vm553_vm7, %v1924_v30, -inf }
0x15c4   :  { %1700 = vrot.lane.b32.xlu1 %v3407_v5, %s3082_s16 }
0x15c5   :  { %1929 = vmax.xlane.f32.xlu0 %v1928_v32 }
0x163e   :  { %v1679_v33 = vpop.xlane.xlu0 %1678 }
0x163f   :  { %v1683_v34 = vsub.f32 %v1675_v1, %v1679_v33  ;;  %v2961_v33 = vld [vmem:[%s2468_s14] sm:$0xff]  }
0x1640   :  { %v1682_v18 = vpop.xlane.xlu1 %1681  ;;  %2812 = vmatpush3.bf16.msra.mxu0 %v2961_v33  ;;  %v2550_v33 = vld [vmem:[%s2471_s21] ss:$0 sm:$0xff] }
0x1641   :  { %v1685_v9 = vmul.f32 1.442695, %v1683_v34  ;;  %v1684_v11 = vsub.f32 %v1676_v4, %v1682_v18  ;;  %2813 = vmatprep.subr.bf16.mxu0 %v3070_v21 }
0x1643   :  { %3031 = vpow2.f32 %v1685_v9  ;;  %v1687_v36 = vmul.f32 1.442695, %v1684_v11  ;;  %v2962_v9 = vld [vmem:[%s2468_s14 + $0x8] sm:$0xff]  }
0x1644   :  { %v1701_v23 = vpop.permute.xlu1 %1700  ;;  %2814 = vmatpush3.bf16.msra.mxu0 %v2962_v9 }
0x1645   :  { %3033 = vpow2.f32 %v1687_v36  ;;  %2782 = vmatpush3.bf16.msra.mxu1 %v1701_v23  ;;  %2827 = vmatprep.subr.bf16.mxu0 %v3070_v21 }
0x1646   :  { %v1803_v38 = vpop.xlane.xlu0 %1802  ;;  %2793 = vmatprep.subr.bf16.mxu1 %v3070_v21 }
0x1647   :  { %v1807_v27 = vsub.f32 %v1799_v14, %v1803_v38 }
0x1649   :  { %v1809_v13 = vmul.f32 1.442695, %v1807_v27 }
0x164a   :  { %v1806_v19 = vpop.xlane.xlu0 %1805 }
0x164b   :  { %3035 = vpow2.f32 %v1809_v13  ;;  %v1808_v39 = vsub.f32 %v1800_v16, %v1806_v19 }
0x164d   :  { %v3032_v40 = vpop.eup %3031  ;;  %v1811_v41 = vmul.f32 1.442695, %v1808_v39 }
0x164e   :  { %v1927_v42 = vpop.xlane.xlu0 %1926  ;;  %v1689_v43 = vsel %vm553_vm7, %v3032_v40, 0.0 }
0x164f   :  { %v3034_v44 = vpop.eup %3033  ;;  %3037 = vpow2.f32 %v1811_v41  ;;  %v1931_v45 = vsub.f32 %v1923_v26, %v1927_v42  ;;  %1690 = vadd.xlane.f32.xlu1 %v1689_v43 }
0x1650   :  { %v1692_v46 = vsel %vm553_vm7, %v3034_v44, 0.0 }
0x1651   :  { %v1933_v47 = vmul.f32 1.442695, %v1931_v45  ;;  %1693 = vadd.xlane.f32.xlu0 %v1692_v46 }
0x1652   :  { %v1930_v48 = vpop.xlane.xlu0 %1929 }
0x1653   :  { %3039 = vpow2.f32 %v1933_v47  ;;  %v1932_v49 = vsub.f32 %v1924_v30, %v1930_v48 }
0x1655   :  { %v3036_v50 = vpop.eup %3035  ;;  %v1935_v51 = vmul.f32 1.442695, %v1932_v49 }
0x1656   :  { %v1813_v53 = vsel %vm553_vm7, %v3036_v50, 0.0 }
0x1657   :  { %3041 = vpow2.f32 %v1935_v51  ;;  %1814 = vadd.xlane.f32.xlu1 %v1813_v53 }
0x1659   :  { %v3038_v55 = vpop.eup %3037 }
0x165a   :  { %v1816_v57 = vsel %vm553_vm7, %v3038_v55, 0.0 }
0x165b   :  { %1817 = vadd.xlane.f32.xlu0 %v1816_v57 }
0x165d   :  { %v3040_v59 = vpop.eup %3039 }
0x165e   :  { %v1937_v60 = vsel %vm553_vm7, %v3040_v59, 0.0 }
0x165f   :  { %1938 = vadd.xlane.f32.xlu1 %v1937_v60 }
0x1661   :  { %v3042_v61 = vpop.eup %3041 }
0x1662   :  { %v1940_v62 = vsel %vm553_vm7, %v3042_v61, 0.0 }
0x1663   :  { %1941 = vadd.xlane.f32.xlu0 %v1940_v62 }
0x1670   :  { %1948 = vrot.lane.b32.xlu1 %v3407_v5, %s3085_s19  ;;  %s3108_s19 = smov 31  }
0x1671   :  { %s2477_s5 = sld [smem:[%s3569_s0 + %s3108_s19]]  }
0x1679   :  { %1824 = vrot.lane.b32.xlu0 %v3407_v5, %s3084_s18  ;;  %s3101_s18 = smov 26  }
0x167a   :  { %s2472_s4 = sld [smem:[%s3569_s0 + %s3101_s18]]  }
0x167b   :  { %s2476_s18 = sld [smem:[%s3569_s0 + %s3107_s15]]  }
0x16dc   :  { %v1691_v63 = vpop.xlane.xlu1 %1690 }
0x16dd   :  { %3043 = vrcp.f32 %v1691_v63 }
0x16de   :  { %v1694_v0 = vpop.xlane.xlu0 %1693 }
0x16df   :  { %3045 = vrcp.f32 %v1694_v0 }
0x16e4   :  { %v1815_v1 = vpop.xlane.xlu1 %1814 }
0x16e5   :  { %3047 = vrcp.f32 %v1815_v1 }
0x16e7   :  { %v3044_v2 = vpop.eup %3043 }
0x16e8   :  { %v1818_v3 = vpop.xlane.xlu0 %1817  ;;  %v1697_v56 = vmul.f32 %v3044_v2, %v3032_v40 }
0x16e9   :  { %v3046_v4 = vpop.eup %3045  ;;  %3049 = vrcp.f32 %v1818_v3 }
0x16ea   :  { %v1698_v58 = vmul.f32 %v3046_v4, %v3034_v44 }
0x16ec   :  { %v1939_v6 = vpop.xlane.xlu1 %1938  ;;  %v1699_v7 = vpack.c.bf16 %v1698_v58, %v1697_v56 }
0x16ed   :  { %3051 = vrcp.f32 %v1939_v6 }
0x16ee   :  { %2784 = vmatmul.mubr.msk.bf16.vlgmr.msra.gmra.mrb[36].mxu1 %vm553_vm7, %v1699_v7 }
0x16ef   :  { %2795 = vmatprep.mubr.msk.bf16.mxu1 %vm3073_vm4, %v3070_v21  ;;  %v3048_v8 = vpop.eup %3047 }
0x16f0   :  { %v1942_v5 = vpop.xlane.xlu0 %1941  ;;  %v1821_v12 = vmul.f32 %v3048_v8, %v3036_v50  ;;  %v1949_v17 = vpop.permute.xlu1 %1948 }
0x16f1   :  { %3053 = vrcp.f32 %v1942_v5 }
0x16f3   :  { %v3050_v10 = vpop.eup %3049 }
0x16f4   :  { %v1822_v14 = vmul.f32 %v3050_v10, %v3038_v55  ;;  %v1825_v15 = vpop.permute.xlu0 %1824 }
0x16f5   :  { %2794 = vmatpush3.bf16.msra.mxu1 %v1825_v15  ;;  %v2964_v15 = vld [vmem:[%s2472_s4 + $0x8] sm:$0xff]  }
0x16f6   :  { %v1823_v16 = vpack.c.bf16 %v1822_v14, %v1821_v12  ;;  %2805 = vmatprep.subr.bf16.mxu1 %v3070_v21  ;;  %v2963_v14 = vld [vmem:[%s2472_s4] sm:$0xff]  }
0x16f7   :  { %v3052_v35 = vpop.eup %3051 }
0x16f8   :  { %2796 = vmatmul.mubr.msk.bf16.vlgmr.msra.gmra.mrb[40].mxu1 %vm553_vm7, %v1823_v16  ;;  %v1945_v22 = vmul.f32 %v3052_v35, %v3040_v59 }
0x16f9   :  { %2806 = vmatpush3.bf16.msra.mxu1 %v1949_v17  ;;  %2807 = vmatprep.mubr.msk.bf16.mxu1 %vm3073_vm4, %v3070_v21 }
0x16fa   :  { %2819 = vmatprep.subr.bf16.mxu1 %v3070_v21 }
0x16fb   :  { %v3054_v20 = vpop.eup %3053 }
0x16fc   :  { %v1946_v24 = vmul.f32 %v3054_v20, %v3042_v61 }
0x16fe   :  { %v1947_v37 = vpack.c.bf16 %v1946_v24, %v1945_v22 }
0x1700   :  { %2808 = vmatmul.mubr.msk.bf16.vlgmr.msra.gmra.mrb[44].mxu1 %vm553_vm7, %v1947_v37 }
0x1701   :  { %2823 = vmatprep.mubr.msk.bf16.mxu1 %vm3073_vm4, %v3070_v21  ;;  %2820 = vmatpush3.bf16.msra.mxu1 %v2963_v14 }
0x1702   :  { %2821 = vmatprep.subr.bf16.mxu1 %v3070_v21 }
0x1705   :  { %2822 = vmatpush3.bf16.msra.mxu1 %v2964_v15 }
0x1706   :  { %2847 = vmatprep.subr.bf16.mxu1 %v3070_v21 }
0x17c1   :  { %v1740_v25 = vpop.f32.mrb[36].mxu1 }
0x17c2   :  { %v2785_v26 = vpop.f32.mrb[37].mxu1 }
0x17c3   :  { %v1743_v29 = vpop.f32.mrb[38].mxu1  ;;  %v2549_v26 = vld [vmem:[%s2470_s7] ss:$0 sm:$0xff] }
0x17c4   :  { %v2914_v30 = vpack.i.bf16 %v1743_v29, %v1740_v25  ;;  %v2786_v32 = vpop.f32.mrb[39].mxu1 }
0x17c6   :  { %2915 = vrot.lane.b32.xlu1 %v2914_v30, %s3072_s22  ;;  %s3100_s22 = smov 23  }
0x17c7   :  { %s2469_s17 = sld [smem:[%s3569_s0 + %s3100_s22]]  }
0x17c8   :  { %s2478_s22 = sld [smem:[%s3569_s0 + %s3106_s9]]  }
0x17cb   :  { %v1864_v34 = vpop.f32.mrb[40].mxu1 }
0x17cc   :  { %v2797_v18 = vpop.f32.mrb[41].mxu1 }
0x17cd   :  { %v1867_v11 = vpop.f32.mrb[42].mxu1 }
0x17ce   :  { %v2919_v36 = vpack.i.bf16 %v1867_v11, %v1864_v34  ;;  %v2798_v23 = vpop.f32.mrb[43].mxu1 }
0x17d0   :  { %2920 = vrot.lane.b32.xlu1 %v2919_v36, %s3086_s20 }
0x17d3   :  { %v1988_v38 = vpop.f32.mrb[44].mxu1 }
0x17d4   :  { %v2809_v27 = vpop.f32.mrb[45].mxu1 }
0x17d5   :  { %v1991_v13 = vpop.f32.mrb[46].mxu1 }
0x17d6   :  { %v2924_v19 = vpack.i.bf16 %v1991_v13, %v1988_v38  ;;  %v2810_v39 = vpop.f32.mrb[47].mxu1 }
0x17d8   :  { %2925 = vrot.lane.b32.xlu0 %v2924_v19, %s3088_s29  ;;  %s3103_s29 = smov 28  }
0x17d9   :  { %s2474_s26 = sld [smem:[%s3569_s0 + %s3103_s29]]  }
0x17df   :  { %v2965_v36 = vld [vmem:[%s2474_s26] sm:$0xff]   ;;  %v2966_v23 = vld [vmem:[%s2474_s26 + $0x8] sm:$0xff]   ;;  %v2967_v38 = vld [vmem:[%s2474_s26 + $0x10] sm:$0xff]  }
0x17e0   :  { %v2968_v27 = vld [vmem:[%s2474_s26 + $0x18] sm:$0xff]   ;;  %v2969_v13 = vld [vmem:[%s2474_s26 + $0x20] sm:$0xff]   ;;  %v2970_v19 = vld [vmem:[%s2474_s26 + $0x28] sm:$0xff]  }
0x17e1   :  { %v2971_v39 = vld [vmem:[%s2474_s26 + $0x30] sm:$0xff]  }
0x1838   :  { %v2916_v40 = vpop.permute.xlu1 %2915 }
0x1839   :  { %v2918_v42 = vunpack.i.h.bf16 %v2916_v40  ;;  %v2917_v43 = vunpack.i.l.bf16 %v2916_v40  ;;  %v2972_v40 = vld [vmem:[%s2474_s26 + $0x38] sm:$0xff]  }
0x183b   :  { %v2020_v47 = vsel %vm500_vm6, %v3451_v54, %v2918_v42  ;;  %v2019_v48 = vsel %vm500_vm6, %v3449_v52, %v2917_v43  ;;  %v2548_v54 = vld [vmem:[%s2469_s17] ss:$0 sm:$0xff] }
0x1842   :  { %v2921_v41 = vpop.permute.xlu1 %2920 }
0x1843   :  { %v2923_v44 = vunpack.i.h.bf16 %v2921_v41  ;;  %v2922_v45 = vunpack.i.l.bf16 %v2921_v41  ;;  %v2551_v41 = vld [vmem:[%s2473_s1] ss:$0 sm:$0xff] }
0x1845   :  { %v2022_v51 = vsel %vm553_vm7, %v2020_v47, %v2923_v44  ;;  %v2021_v53 = vsel %vm553_vm7, %v2019_v48, %v2922_v45 }
0x184a   :  { %v2926_v46 = vpop.permute.xlu0 %2925 }
0x184b   :  { %v2928_v49 = vunpack.i.h.bf16 %v2926_v46  ;;  %v2927_v50 = vunpack.i.l.bf16 %v2926_v46 }
0x184d   :  { %v2024_v55 = vsel %vm1025_vm8, %v2022_v51, %v2928_v49  ;;  %v2023_v57 = vsel %vm1025_vm8, %v2021_v53, %v2927_v50 }
0x184e   :  { %v2029_v59 = vpack.c.bf16 %v2024_v55, %v2023_v57 }
0x1850   :  { %2816 = vmatmul.mubr.msk.bf16.vlgmr.msra.gmra.mrb[40].mxu0 %vm322_vm0, %v2029_v59 }
0x1851   :  { %2843 = vmatprep.mubr.msk.bf16.mxu0 %vm3073_vm4, %v3070_v21  ;;  %2828 = vmatpush3.bf16.msra.mxu0 %v2965_v36 }
0x1852   :  { %2829 = vmatprep.subr.bf16.mxu0 %v3070_v21 }
0x1855   :  { %2830 = vmatpush3.bf16.msra.mxu0 %v2966_v23 }
0x1856   :  { %2831 = vmatprep.subr.bf16.mxu0 %v3070_v21 }
0x1859   :  { %2832 = vmatpush3.bf16.msra.mxu0 %v2967_v38 }
0x185a   :  { %2833 = vmatprep.subr.bf16.mxu0 %v3070_v21 }
0x185d   :  { %2834 = vmatpush3.bf16.msra.mxu0 %v2968_v27 }
0x185e   :  { %2835 = vmatprep.subr.bf16.mxu0 %v3070_v21 }
0x1861   :  { %2836 = vmatpush3.bf16.msra.mxu0 %v2969_v13 }
0x1862   :  { %2837 = vmatprep.subr.bf16.mxu0 %v3070_v21 }
0x1865   :  { %2838 = vmatpush3.bf16.msra.mxu0 %v2970_v19 }
0x1866   :  { %2839 = vmatprep.subr.bf16.mxu0 %v3070_v21 }
0x1869   :  { %2840 = vmatpush3.bf16.msra.mxu0 %v2971_v39 }
0x186a   :  { %2841 = vmatprep.subr.bf16.mxu0 %v3070_v21 }
0x186d   :  { %2842 = vmatpush3.bf16.msra.mxu0 %v2972_v40 }
0x1923   :  { %v2079_v52 = vpop.f32.mrb[40].mxu0 }
0x1924   :  { %v2086_v60 = vadd.f32 %v2079_v52, %v3376_v28  ;;  %v2817_v61 = vpop.f32.mrb[41].mxu0 }
0x1925   :  { %v2082_v62 = vpop.f32.mrb[42].mxu0 }
0x1926   :  { %v3508_v63 = vadd.f32 %v2548_v54, %v2086_v60  ;;  %v2087_v0 = vadd.f32 %v2082_v62, %v3379_v31  ;;  %v2818_v1 = vpop.f32.mrb[43].mxu0 }
0x1928   :  { %v2099_v2 = vsel %vm322_vm0, %v3508_v63, 0.0  ;;  %v2096_v3 = vadd.f32 %v2548_v54, %v2087_v0 }
0x1929   :  { %2100 = vadd.xlane.f32.xlu1 %v2099_v2 }
0x192a   :  { %v2102_v4 = vsel %vm322_vm0, %v2096_v3, 0.0 }
0x192b   :  { %2103 = vadd.xlane.f32.xlu0 %v2102_v4 }
0x19b6   :  { %v2101_v56 = vpop.xlane.xlu1 %2100 }
0x19b7   :  { %v2105_v58 = vmul.f32 0.03125, %v2101_v56 }
0x19b8   :  { %v2104_v6 = vpop.xlane.xlu0 %2103 }
0x19b9   :  { %v2107_v28 = vsub.f32 %v3508_v63, %v2105_v58  ;;  %v2106_v7 = vmul.f32 0.03125, %v2104_v6  ;;  %v2563_v6 = vld [vmem:[%s2475_s8] ss:$0 sm:$0xff] }
0x19bb   :  { %v2108_v5 = vsub.f32 %v2096_v3, %v2106_v7  ;;  %v2109_v8 = vmul.f32 %v2107_v28, %v2107_v28 }
0x19bd   :  { %v2111_v10 = vsel %vm322_vm0, %v2109_v8, 0.0  ;;  %v2110_v31 = vmul.f32 %v2108_v5, %v2108_v5 }
0x19be   :  { %2112 = vadd.xlane.f32.xlu0 %v2111_v10 }
0x19bf   :  { %v2114_v12 = vsel %vm322_vm0, %v2110_v31, 0.0 }
0x19c2   :  { %2115 = vadd.xlane.f32.xlu0 %v2114_v12 }
0x1a4b   :  { %v2113_v16 = vpop.xlane.xlu0 %2112 }
0x1a4c   :  { %v2117_v17 = vmul.f32 0.03125, %v2113_v16 }
0x1a4e   :  { %v2119_v35 = vadd.f32 1e-05, %v2117_v17 }
0x1a4f   :  { %v2116_v20 = vpop.xlane.xlu0 %2115 }
0x1a50   :  { %3055 = vrsqrt.f32 %v2119_v35  ;;  %v2118_v22 = vmul.f32 0.03125, %v2116_v20  ;;  %v2974_v20 = vld [vmem:[%s2478_s22 + $0x8] sm:$0xff]  }
0x1a52   :  { %v2120_v24 = vadd.f32 1e-05, %v2118_v22 }
0x1a54   :  { %3057 = vrsqrt.f32 %v2120_v24 }
0x1a5a   :  { %v3056_v37 = vpop.eup %3055 }
0x1a5b   :  { %v2123_v25 = vmul.f32 %v3056_v37, %v2107_v28 }
0x1a5d   :  { %v2131_v30 = vmul.f32 %v2549_v26, %v2123_v25 }
0x1a5e   :  { %v3058_v29 = vpop.eup %3057 }
0x1a5f   :  { %v2124_v32 = vmul.f32 %v3058_v29, %v2108_v5  ;;  %v2139_v18 = vadd.f32 %v2550_v33, %v2131_v30  ;;  %v2565_v30 = vld [vmem:[%s2477_s5] ss:$0 sm:$0xff] }
0x1a61   :  { %v2132_v34 = vmul.f32 %v2549_v26, %v2124_v32  ;;  %v2564_v26 = vld [vmem:[%s2476_s18] ss:$0 sm:$0xff] }
0x1a63   :  { %v2140_v9 = vadd.f32 %v2550_v33, %v2132_v34  ;;  %v2566_v34 = vld [vmem:[%s2479_s11] ss:$0 sm:$0xff] }
0x1a65   :  { %v2145_v11 = vpack.c.bf16 %v2140_v9, %v2139_v18 }
0x1a67   :  { %2824 = vmatmul.mubr.msk.bf16.vlgmr.msra.gmra.mrb[48].mxu1 %vm322_vm0, %v2145_v11 }
0x1a68   :  { %2851 = vmatprep.mubr.msk.bf16.mxu1 %vm3073_vm4, %v3070_v21 }
0x1b3a   :  { %v2202_v42 = vpop.f32.mrb[48].mxu1 }
0x1b3b   :  { %v2203_v43 = vadd.f32 %v2551_v41, %v2202_v42  ;;  %v2825_v44 = vpop.f32.mrb[49].mxu1 }
0x1b3c   :  { %v2205_v45 = vpop.f32.mrb[50].mxu1 }
0x1b3d   :  { %v2211_v46 = vmul.f32 0.044715, %v2203_v43  ;;  %v2206_v47 = vadd.f32 %v2551_v41, %v2205_v45  ;;  %v2826_v48 = vpop.f32.mrb[51].mxu1  ;;  %v2209_v0 = vmul.f32 0.5, %v2203_v43 }
0x1b3f   :  { %v2213_v49 = vmul.f32 %v2211_v46, %v2203_v43  ;;  %v2212_v50 = vmul.f32 0.044715, %v2206_v47  ;;  %v2210_v1 = vmul.f32 0.5, %v2206_v47 }
0x1b41   :  { %v2215_v51 = vmul.f32 %v2213_v49, %v2203_v43  ;;  %v2214_v53 = vmul.f32 %v2212_v50, %v2206_v47 }
0x1b43   :  { %v2217_v55 = vadd.f32 %v2215_v51, %v2203_v43  ;;  %v2216_v57 = vmul.f32 %v2214_v53, %v2206_v47 }
0x1b45   :  { %v2219_v59 = vmul.f32 0.7978846, %v2217_v55  ;;  %v2218_v52 = vadd.f32 %v2216_v57, %v2206_v47 }
0x1b47   :  { %3059 = vtanh.f32 %v2219_v59  ;;  %v2220_v54 = vmul.f32 0.7978846, %v2218_v52 }
0x1b49   :  { %3061 = vtanh.f32 %v2220_v54 }
0x1b51   :  { %v3060_v60 = vpop.eup %3059 }
0x1b52   :  { %v2223_v61 = vadd.f32 1.0, %v3060_v60 }
0x1b53   :  { %v3062_v62 = vpop.eup %3061 }
0x1b54   :  { %v2224_v2 = vadd.f32 1.0, %v3062_v62  ;;  %v2225_v3 = vmul.f32 %v2223_v61, %v2209_v0 }
0x1b56   :  { %v2226_v4 = vmul.f32 %v2224_v2, %v2210_v1 }
0x1b58   :  { %v2243_v56 = vpack.c.bf16 %v2226_v4, %v2225_v3 }
0x1b5a   :  { %2844 = vmatmul.mubr.bf16.vlgmr.msra.gmra.mrb[44].mxu0 %v2243_v56 }
0x1c2d   :  { %v2326_v58 = vpop.f32.mrb[44].mxu0 }
0x1c2e   :  { %v2332_v28 = vadd.f32 %v2326_v58, %v3508_v63  ;;  %v2845_v7 = vpop.f32.mrb[45].mxu0  ;;  %v2973_v63 = vld [vmem:[%s2478_s22] sm:$0xff]  }
0x1c2f   :  { %v2329_v5 = vpop.f32.mrb[46].mxu0  ;;  %2848 = vmatpush3.bf16.msra.mxu1 %v2973_v63 }
0x1c30   :  { %v2340_v8 = vadd.f32 %v2563_v6, %v2332_v28  ;;  %v2846_v10 = vpop.f32.mrb[47].mxu0  ;;  %2849 = vmatprep.subr.bf16.mxu1 %v3070_v21 }
0x1c32   :  { %2342 = vst.msk [vmem:[#allocation3] sm:$0x1] %vm329_vm1, %v2340_v8 }
0x1c33   :  { %2344 = vst.msk [vmem:[#allocation3 - $0x4] sm:$0x20] %vm2343_vm9, %v2340_v8  ;;  %2850 = vmatpush3.bf16.msra.mxu1 %v2974_v20 }
0x1c3a   :  { %v2345_v31 = vld [vmem:[#allocation3] sm:$0xff] }
0x1c3b   :  { %v2348_v12 = vsel %vm322_vm0, %v2345_v31, 0.0 }
0x1c3c   :  { %2349 = vadd.xlane.f32.xlu1 %v2348_v12 }
0x1cc9   :  { %v2350_v14 = vpop.xlane.xlu1 %2349 }
0x1cca   :  { %v2351_v15 = vmul.f32 0.03125, %v2350_v14 }
0x1ccc   :  { %v2352_v16 = vsub.f32 %v2345_v31, %v2351_v15 }
0x1cce   :  { %v2353_v17 = vmul.f32 %v2352_v16, %v2352_v16 }
0x1cd0   :  { %v2354_v35 = vsel %vm322_vm0, %v2353_v17, 0.0 }
0x1cd1   :  { %2355 = vadd.xlane.f32.xlu0 %v2354_v35 }
0x1d5e   :  { %v2356_v22 = vpop.xlane.xlu0 %2355 }
0x1d5f   :  { %v2357_v24 = vmul.f32 0.03125, %v2356_v22 }
0x1d61   :  { %v2358_v37 = vadd.f32 1e-05, %v2357_v24 }
0x1d63   :  { %3063 = vrsqrt.f32 %v2358_v37 }
0x1d6d   :  { %v3064_v25 = vpop.eup %3063 }
0x1d6e   :  { %v2360_v29 = vmul.f32 %v3064_v25, %v2352_v16 }
0x1d70   :  { %v2367_v21 = vmul.f32 %v2564_v26, %v2360_v29 }
0x1d72   :  { %v2374_v32 = vadd.f32 %v2565_v30, %v2367_v21 }
0x1d74   :  { %v2379_v33 = vpack.c.bf16 %v2374_v32, %v2374_v32 }
0x1d76   :  { %2852 = vmatmul.mubr.msk.bf16.vlgmr.msra.gmra.mrb[52].mxu1 %vm322_vm0, %v2379_v33 }
0x1e49   :  { %v2436_v18 = vpop.f32.mrb[52].mxu1 }
0x1e4a   :  { %v2437_v9 = vadd.f32 %v2566_v34, %v2436_v18  ;;  %v2853_v11 = vpop.f32.mrb[53].mxu1 }
0x1e4b   :  { %v2439_v36 = vpop.f32.mrb[54].mxu1 }
0x1e4c   :  { %2442 = vst [vmem:[%s2480_s23] sm:$0xff] %v2437_v9  ;;  %v2854_v23 = vpop.f32.mrb[55].mxu1 }

</bundles_post_ra>
